<compile_context>
chip_gen: v7x
topology: tpu7x:2x2x1
jax: 0.10.0
libtpu: 0.0.40
codegen_flags: <defaults>
</compile_context>

<pallas_src>
import functools

import numpy as np

import jax
import jax.numpy as jnp
from jax import lax
from jax.experimental import pallas as pl
from jax.experimental.pallas import tpu as pltpu


def _round_up(x, m):
    return ((x + m - 1) // m) * m


def _conv3x3x3_plane_kernel(x0_ref, x1_ref, x2_ref, w_ref, shift_ref, out_ref,
                            *, H, W, Cout):
    """One (n, d) output plane per grid step (in-kernel im2col).

    x{0,1,2}_ref: [H+2, W+2, Cin]   halo-padded input planes d, d+1, d+2
    w_ref       : [27, Cin, Cout_pad]  BN-folded weights, tap-major (resident)
    shift_ref   : [1, Cout_pad] f32    folded conv-bias + BN shift (resident)
    out_ref     : [H*W, Cout]          unpadded, channels-last
    """
    cout_pad = shift_ref.shape[-1]
    cin = x0_ref.shape[-1]
    # Fold the shift into the accumulator init (no separate epilogue add).
    acc = jnp.broadcast_to(shift_ref[...], (H * W, cout_pad)).astype(jnp.float32)
    for kd, xp_ref in enumerate((x0_ref, x1_ref, x2_ref)):
        xp = xp_ref[...]                                   # [H+2, W+2, Cin]
        for kh in range(3):
            for kw in range(3):
                xs = xp[kh:kh + H, kw:kw + W, :].reshape(H * W, cin)
                w_tap = w_ref[kd * 9 + kh * 3 + kw]        # [Cin, Cout_pad]
                acc = acc + jnp.dot(xs, w_tap,
                                    preferred_element_type=jnp.float32)
    out_ref[...] = acc[:, :Cout].astype(out_ref.dtype)


def conv3d_bn(x_ncdhw, weight_oidhw, shift, *, compute_dtype=jnp.bfloat16,
              out_dtype=None):
    """y[n,d,h,w,o] = sum_{c,kd,kh,kw} x[n,c,d+kd-1,h+kh-1,w+kw-1]*w[o,c,kd,kh,kw] + shift[o]

    Returns channels-last output [N, D, H, W, Cout]."""
    N, Cin, D, H, W = x_ncdhw.shape
    Cout = weight_oidhw.shape[0]
    Cout_pad = _round_up(Cout, 128)
    if out_dtype is None:
        out_dtype = x_ncdhw.dtype

    # Single layout pass over the input: NCDHW -> halo-padded NDHWC in the
    # compute dtype (bf16 by default; accumulation stays f32 in the kernel).
    x_cl = jnp.transpose(x_ncdhw, (0, 2, 3, 4, 1)).astype(compute_dtype)
    x_pad = jnp.pad(x_cl, ((0, 0), (1, 1), (1, 1), (1, 1), (0, 0)))

    # Weights: [Cout, Cin, 3,3,3] -> tap-major [27, Cin, Cout_pad] (tiny, resident).
    w27 = jnp.transpose(weight_oidhw, (2, 3, 4, 1, 0)).reshape(27, Cin, Cout)
    w27 = jnp.pad(w27, ((0, 0), (0, 0), (0, Cout_pad - Cout))).astype(compute_dtype)

    shift2 = jnp.pad(shift.reshape(1, Cout).astype(jnp.float32),
                     ((0, 0), (0, Cout_pad - Cout)))

    def x_spec(off):
        # Same input array, shifted by `off` along the (halo-padded) depth axis.
        return pl.BlockSpec((None, None, H + 2, W + 2, Cin),
                            lambda n, d, _o=off: (n, d + _o, 0, 0, 0))

    kernel = functools.partial(_conv3x3x3_plane_kernel, H=H, W=W, Cout=Cout)

    out = pl.pallas_call(
        kernel,
        out_shape=jax.ShapeDtypeStruct((N, D, H * W, Cout), out_dtype),
        grid=(N, D),
        in_specs=[
            x_spec(0), x_spec(1), x_spec(2),                   # planes d, d+1, d+2
            pl.BlockSpec((27, Cin, Cout_pad), lambda n, d: (0, 0, 0)),
            pl.BlockSpec((1, Cout_pad), lambda n, d: (0, 0)),
        ],
        out_specs=pl.BlockSpec((None, None, H * W, Cout),
                               lambda n, d: (n, d, 0, 0)),
        compiler_params=pltpu.CompilerParams(
            dimension_semantics=("parallel", "parallel"),  # >=2 tiles -> both v7x TCs
            vmem_limit_bytes=32 * 1024 * 1024,
        ),
    )(x_pad, x_pad, x_pad, w27, shift2)

    return out.reshape(N, D, H, W, Cout)   # channels-last, no Cout padding


# ----------------------------- Net (functional) -----------------------------

def init_net_params(key, in_channel, out_channel):
    k1, k2, k3, k4 = jax.random.split(key, 4)
    fan_in = in_channel * 27
    bound = 1.0 / np.sqrt(fan_in)
    return dict(
        conv_w=jax.random.uniform(k1, (out_channel, in_channel, 3, 3, 3),
                                  jnp.float32, -bound, bound),
        conv_b=jax.random.uniform(k2, (out_channel,), jnp.float32, -bound, bound),
        gamma=jax.random.normal(k3, (out_channel,), jnp.float32),   # BN.weight = randn
        beta=jax.random.normal(k4, (out_channel,), jnp.float32),    # BN.bias   = randn
        running_mean=jnp.zeros((out_channel,), jnp.float32),
        running_var=jnp.ones((out_channel,), jnp.float32),
        eps=jnp.float32(1e-5),
    )


def net_forward(params, x, fuse=False, compute_dtype=jnp.bfloat16):
    """Forward pass of `Net`. transI_BN folds BN (running stats) into the conv
    weights/bias; with running stats this is mathematically identical to
    BN(conv1(x)), so BOTH branches use the same folded conv and the same
    Pallas kernel (shift-only epilogue, no redundant ones-scale multiply)."""
    std = jnp.sqrt(params["running_var"] + params["eps"])
    g_over_std = params["gamma"] / std
    w_eff = params["conv_w"] * g_over_std.reshape(-1, 1, 1, 1, 1)
    b_eff = (g_over_std * params["conv_b"]
             - g_over_std * params["running_mean"] + params["beta"])
    del fuse  # both branches compute the identical folded conv (see docstring)
    y_ndhwc = conv3d_bn(x, w_eff, b_eff, compute_dtype=compute_dtype)
    # Transpose back to NCDHW only to match the PyTorch module's output layout;
    # channels-last consumers can call conv3d_bn(...) directly and skip this pass.
    return jnp.transpose(y_ndhwc, (0, 4, 1, 2, 3))


# ------------------------------ reference (JAX) ------------------------------

def ref_forward(params, x):
    y = lax.conv_general_dilated(
        x, params["conv_w"], window_strides=(1, 1, 1),
        padding=[(1, 1), (1, 1), (1, 1)],
        dimension_numbers=("NCDHW", "OIDHW", "NCDHW"))
    y = y + params["conv_b"].reshape(1, -1, 1, 1, 1)
    std = jnp.sqrt(params["running_var"] + params["eps"]).reshape(1, -1, 1, 1, 1)
    g = params["gamma"].reshape(1, -1, 1, 1, 1)
    b = params["beta"].reshape(1, -1, 1, 1, 1)
    m = params["running_mean"].reshape(1, -1, 1, 1, 1)
    return g * (y - m) / std + b


if __name__ == "__main__":
    key = jax.random.PRNGKey(0)
    kp, kx = jax.random.split(key)

    in_channel, out_channel = 4, 4
    N, D, H, W = 2, 8, 8, 8
    params = init_net_params(kp, in_channel, out_channel)
    x = jax.random.normal(kx, (N, in_channel, D, H, W), jnp.float32)

    out_ref = jax.block_until_ready(ref_forward(params, x))

    # f32 matmul inputs: tight structural check against the XLA reference conv.
    out_f32 = jax.block_until_ready(
        net_forward(params, x, fuse=False, compute_dtype=jnp.float32))
    np.testing.assert_allclose(np.asarray(out_f32), np.asarray(out_ref),
                               rtol=1e-4, atol=1e-4)
    assert out_f32.shape == (N, out_channel, D, H, W)

    # Default path: bf16 matmul inputs, f32 accumulation/shift (tolerance
    # tightened from 1e-1 to 2e-2 per review).
    out_bn = jax.block_until_ready(net_forward(params, x, fuse=False))
    np.testing.assert_allclose(np.asarray(out_bn), np.asarray(out_ref),
                               rtol=2e-2, atol=2e-2)

    # fuse=True runs the identical folded-conv computation.
    out_fused = jax.block_until_ready(net_forward(params, x, fuse=True))
    np.testing.assert_allclose(np.asarray(out_fused), np.asarray(out_bn),
                               rtol=0.0, atol=1e-6)

    print("KERNEL_OK")
</pallas_src>

<mosaic_0001>
module attributes {stable_mosaic.version = 11 : i64} {
  func.func @_conv3x3x3_plane_kernel(%arg0: i32, %arg1: i32, %arg2: memref<1x1x10x10x4xf32, #tpu.memory_space<vmem>>, %arg3: memref<1x1x10x10x4xf32, #tpu.memory_space<vmem>>, %arg4: memref<1x1x10x10x4xf32, #tpu.memory_space<vmem>>, %arg5: memref<27x4x128xf32, #tpu.memory_space<vmem>>, %arg6: memref<1x128xf32, #tpu.memory_space<vmem>>, %arg7: memref<1x1x64x4xf32, #tpu.memory_space<vmem>>) attributes {dimension_semantics = [#tpu.dimension_semantics<parallel>, #tpu.dimension_semantics<parallel>], iteration_bounds = array<i64: 2, 8>, scalar_prefetch = 0 : i64, scratch_operands = 0 : i64, tpu.core_type = #tpu.core_type<tc>, window_params = [{transform_indices = @transform_0, window_bounds = array<i64: 1, 1, 10, 10, 4>}, {transform_indices = @transform_1, window_bounds = array<i64: 1, 1, 10, 10, 4>}, {transform_indices = @transform_2, window_bounds = array<i64: 1, 1, 10, 10, 4>}, {pipeline_mode = #tpu.pipeline_mode<synchronous>, transform_indices = @transform_3, window_bounds = array<i64: 27, 4, 128>}, {pipeline_mode = #tpu.pipeline_mode<synchronous>, transform_indices = @transform_4, window_bounds = array<i64: 1, 128>}, {transform_indices = @transform_5, window_bounds = array<i64: 1, 1, 64, 4>}]} {
    %c0 = arith.constant 0 : index
    %c0_0 = arith.constant 0 : index
    %0 = vector.load %arg6[%c0, %c0_0] : memref<1x128xf32, #tpu.memory_space<vmem>>, vector<1x128xf32>
    %1 = vector.shape_cast %0 : vector<1x128xf32> to vector<1x128xf32>
    %2 = vector.broadcast %1 : vector<1x128xf32> to vector<64x128xf32>
    %c0_1 = arith.constant 0 : index
    %c0_2 = arith.constant 0 : index
    %c0_3 = arith.constant 0 : index
    %c0_4 = arith.constant 0 : index
    %c0_5 = arith.constant 0 : index
    %3 = vector.load %arg2[%c0_1, %c0_2, %c0_3, %c0_4, %c0_5] : memref<1x1x10x10x4xf32, #tpu.memory_space<vmem>>, vector<1x1x10x10x4xf32>
    %4 = vector.shape_cast %3 : vector<1x1x10x10x4xf32> to vector<10x10x4xf32>
    %5 = vector.extract_strided_slice %4 {offsets = [0, 0, 0], sizes = [8, 8, 4], strides = [1, 1, 1]} : vector<10x10x4xf32> to vector<8x8x4xf32>
    %6 = vector.shape_cast %5 : vector<8x8x4xf32> to vector<64x4xf32>
    %c0_6 = arith.constant 0 : index
    %c0_7 = arith.constant 0 : index
    %c0_8 = arith.constant 0 : index
    %7 = vector.load %arg5[%c0_6, %c0_7, %c0_8] : memref<27x4x128xf32, #tpu.memory_space<vmem>>, vector<1x4x128xf32>
    %8 = vector.shape_cast %7 : vector<1x4x128xf32> to vector<4x128xf32>
    %cst = arith.constant dense<0.000000e+00> : vector<64x128xf32>
    %9 = tpu.matmul %6, %8, %cst {dimension_numbers = #tpu.dot_dimension_numbers<[1], [0], [0], [1], [0, 0, 1, 1], [], []>} : vector<64x4xf32>, vector<4x128xf32>, vector<64x128xf32> -> vector<64x128xf32>
    %10 = arith.addf %2, %9 : vector<64x128xf32>
    %11 = vector.extract_strided_slice %4 {offsets = [0, 1, 0], sizes = [8, 8, 4], strides = [1, 1, 1]} : vector<10x10x4xf32> to vector<8x8x4xf32>
    %12 = vector.shape_cast %11 : vector<8x8x4xf32> to vector<64x4xf32>
    %c1 = arith.constant 1 : index
    %c0_9 = arith.constant 0 : index
    %c0_10 = arith.constant 0 : index
    %13 = vector.load %arg5[%c1, %c0_9, %c0_10] : memref<27x4x128xf32, #tpu.memory_space<vmem>>, vector<1x4x128xf32>
    %14 = vector.shape_cast %13 : vector<1x4x128xf32> to vector<4x128xf32>
    %cst_11 = arith.constant dense<0.000000e+00> : vector<64x128xf32>
    %15 = tpu.matmul %12, %14, %cst_11 {dimension_numbers = #tpu.dot_dimension_numbers<[1], [0], [0], [1], [0, 0, 1, 1], [], []>} : vector<64x4xf32>, vector<4x128xf32>, vector<64x128xf32> -> vector<64x128xf32>
    %16 = arith.addf %10, %15 : vector<64x128xf32>
    %17 = vector.extract_strided_slice %4 {offsets = [0, 2, 0], sizes = [8, 8, 4], strides = [1, 1, 1]} : vector<10x10x4xf32> to vector<8x8x4xf32>
    %18 = vector.shape_cast %17 : vector<8x8x4xf32> to vector<64x4xf32>
    %c2 = arith.constant 2 : index
    %c0_12 = arith.constant 0 : index
    %c0_13 = arith.constant 0 : index
    %19 = vector.load %arg5[%c2, %c0_12, %c0_13] : memref<27x4x128xf32, #tpu.memory_space<vmem>>, vector<1x4x128xf32>
    %20 = vector.shape_cast %19 : vector<1x4x128xf32> to vector<4x128xf32>
    %cst_14 = arith.constant dense<0.000000e+00> : vector<64x128xf32>
    %21 = tpu.matmul %18, %20, %cst_14 {dimension_numbers = #tpu.dot_dimension_numbers<[1], [0], [0], [1], [0, 0, 1, 1], [], []>} : vector<64x4xf32>, vector<4x128xf32>, vector<64x128xf32> -> vector<64x128xf32>
    %22 = arith.addf %16, %21 : vector<64x128xf32>
    %23 = vector.extract_strided_slice %4 {offsets = [1, 0, 0], sizes = [8, 8, 4], strides = [1, 1, 1]} : vector<10x10x4xf32> to vector<8x8x4xf32>
    %24 = vector.shape_cast %23 : vector<8x8x4xf32> to vector<64x4xf32>
    %c3 = arith.constant 3 : index
    %c0_15 = arith.constant 0 : index
    %c0_16 = arith.constant 0 : index
    %25 = vector.load %arg5[%c3, %c0_15, %c0_16] : memref<27x4x128xf32, #tpu.memory_space<vmem>>, vector<1x4x128xf32>
    %26 = vector.shape_cast %25 : vector<1x4x128xf32> to vector<4x128xf32>
    %cst_17 = arith.constant dense<0.000000e+00> : vector<64x128xf32>
    %27 = tpu.matmul %24, %26, %cst_17 {dimension_numbers = #tpu.dot_dimension_numbers<[1], [0], [0], [1], [0, 0, 1, 1], [], []>} : vector<64x4xf32>, vector<4x128xf32>, vector<64x128xf32> -> vector<64x128xf32>
    %28 = arith.addf %22, %27 : vector<64x128xf32>
    %29 = vector.extract_strided_slice %4 {offsets = [1, 1, 0], sizes = [8, 8, 4], strides = [1, 1, 1]} : vector<10x10x4xf32> to vector<8x8x4xf32>
    %30 = vector.shape_cast %29 : vector<8x8x4xf32> to vector<64x4xf32>
    %c4 = arith.constant 4 : index
    %c0_18 = arith.constant 0 : index
    %c0_19 = arith.constant 0 : index
    %31 = vector.load %arg5[%c4, %c0_18, %c0_19] : memref<27x4x128xf32, #tpu.memory_space<vmem>>, vector<1x4x128xf32>
    %32 = vector.shape_cast %31 : vector<1x4x128xf32> to vector<4x128xf32>
    %cst_20 = arith.constant dense<0.000000e+00> : vector<64x128xf32>
    %33 = tpu.matmul %30, %32, %cst_20 {dimension_numbers = #tpu.dot_dimension_numbers<[1], [0], [0], [1], [0, 0, 1, 1], [], []>} : vector<64x4xf32>, vector<4x128xf32>, vector<64x128xf32> -> vector<64x128xf32>
    %34 = arith.addf %28, %33 : vector<64x128xf32>
    %35 = vector.extract_strided_slice %4 {offsets = [1, 2, 0], sizes = [8, 8, 4], strides = [1, 1, 1]} : vector<10x10x4xf32> to vector<8x8x4xf32>
    %36 = vector.shape_cast %35 : vector<8x8x4xf32> to vector<64x4xf32>
    %c5 = arith.constant 5 : index
    %c0_21 = arith.constant 0 : index
    %c0_22 = arith.constant 0 : index
    %37 = vector.load %arg5[%c5, %c0_21, %c0_22] : memref<27x4x128xf32, #tpu.memory_space<vmem>>, vector<1x4x128xf32>
    %38 = vector.shape_cast %37 : vector<1x4x128xf32> to vector<4x128xf32>
    %cst_23 = arith.constant dense<0.000000e+00> : vector<64x128xf32>
    %39 = tpu.matmul %36, %38, %cst_23 {dimension_numbers = #tpu.dot_dimension_numbers<[1], [0], [0], [1], [0, 0, 1, 1], [], []>} : vector<64x4xf32>, vector<4x128xf32>, vector<64x128xf32> -> vector<64x128xf32>
    %40 = arith.addf %34, %39 : vector<64x128xf32>
    %41 = vector.extract_strided_slice %4 {offsets = [2, 0, 0], sizes = [8, 8, 4], strides = [1, 1, 1]} : vector<10x10x4xf32> to vector<8x8x4xf32>
    %42 = vector.shape_cast %41 : vector<8x8x4xf32> to vector<64x4xf32>
    %c6 = arith.constant 6 : index
    %c0_24 = arith.constant 0 : index
    %c0_25 = arith.constant 0 : index
    %43 = vector.load %arg5[%c6, %c0_24, %c0_25] : memref<27x4x128xf32, #tpu.memory_space<vmem>>, vector<1x4x128xf32>
    %44 = vector.shape_cast %43 : vector<1x4x128xf32> to vector<4x128xf32>
    %cst_26 = arith.constant dense<0.000000e+00> : vector<64x128xf32>
    %45 = tpu.matmul %42, %44, %cst_26 {dimension_numbers = #tpu.dot_dimension_numbers<[1], [0], [0], [1], [0, 0, 1, 1], [], []>} : vector<64x4xf32>, vector<4x128xf32>, vector<64x128xf32> -> vector<64x128xf32>
    %46 = arith.addf %40, %45 : vector<64x128xf32>
    %47 = vector.extract_strided_slice %4 {offsets = [2, 1, 0], sizes = [8, 8, 4], strides = [1, 1, 1]} : vector<10x10x4xf32> to vector<8x8x4xf32>
    %48 = vector.shape_cast %47 : vector<8x8x4xf32> to vector<64x4xf32>
    %c7 = arith.constant 7 : index
    %c0_27 = arith.constant 0 : index
    %c0_28 = arith.constant 0 : index
    %49 = vector.load %arg5[%c7, %c0_27, %c0_28] : memref<27x4x128xf32, #tpu.memory_space<vmem>>, vector<1x4x128xf32>
    %50 = vector.shape_cast %49 : vector<1x4x128xf32> to vector<4x128xf32>
    %cst_29 = arith.constant dense<0.000000e+00> : vector<64x128xf32>
    %51 = tpu.matmul %48, %50, %cst_29 {dimension_numbers = #tpu.dot_dimension_numbers<[1], [0], [0], [1], [0, 0, 1, 1], [], []>} : vector<64x4xf32>, vector<4x128xf32>, vector<64x128xf32> -> vector<64x128xf32>
    %52 = arith.addf %46, %51 : vector<64x128xf32>
    %53 = vector.extract_strided_slice %4 {offsets = [2, 2, 0], sizes = [8, 8, 4], strides = [1, 1, 1]} : vector<10x10x4xf32> to vector<8x8x4xf32>
    %54 = vector.shape_cast %53 : vector<8x8x4xf32> to vector<64x4xf32>
    %c8 = arith.constant 8 : index
    %c0_30 = arith.constant 0 : index
    %c0_31 = arith.constant 0 : index
    %55 = vector.load %arg5[%c8, %c0_30, %c0_31] : memref<27x4x128xf32, #tpu.memory_space<vmem>>, vector<1x4x128xf32>
    %56 = vector.shape_cast %55 : vector<1x4x128xf32> to vector<4x128xf32>
    %cst_32 = arith.constant dense<0.000000e+00> : vector<64x128xf32>
    %57 = tpu.matmul %54, %56, %cst_32 {dimension_numbers = #tpu.dot_dimension_numbers<[1], [0], [0], [1], [0, 0, 1, 1], [], []>} : vector<64x4xf32>, vector<4x128xf32>, vector<64x128xf32> -> vector<64x128xf32>
    %58 = arith.addf %52, %57 : vector<64x128xf32>
    %c0_33 = arith.constant 0 : index
    %c0_34 = arith.constant 0 : index
    %c0_35 = arith.constant 0 : index
    %c0_36 = arith.constant 0 : index
    %c0_37 = arith.constant 0 : index
    %59 = vector.load %arg3[%c0_33, %c0_34, %c0_35, %c0_36, %c0_37] : memref<1x1x10x10x4xf32, #tpu.memory_space<vmem>>, vector<1x1x10x10x4xf32>
    %60 = vector.shape_cast %59 : vector<1x1x10x10x4xf32> to vector<10x10x4xf32>
    %61 = vector.extract_strided_slice %60 {offsets = [0, 0, 0], sizes = [8, 8, 4], strides = [1, 1, 1]} : vector<10x10x4xf32> to vector<8x8x4xf32>
    %62 = vector.shape_cast %61 : vector<8x8x4xf32> to vector<64x4xf32>
    %c9 = arith.constant 9 : index
    %c0_38 = arith.constant 0 : index
    %c0_39 = arith.constant 0 : index
    %63 = vector.load %arg5[%c9, %c0_38, %c0_39] : memref<27x4x128xf32, #tpu.memory_space<vmem>>, vector<1x4x128xf32>
    %64 = vector.shape_cast %63 : vector<1x4x128xf32> to vector<4x128xf32>
    %cst_40 = arith.constant dense<0.000000e+00> : vector<64x128xf32>
    %65 = tpu.matmul %62, %64, %cst_40 {dimension_numbers = #tpu.dot_dimension_numbers<[1], [0], [0], [1], [0, 0, 1, 1], [], []>} : vector<64x4xf32>, vector<4x128xf32>, vector<64x128xf32> -> vector<64x128xf32>
    %66 = arith.addf %58, %65 : vector<64x128xf32>
    %67 = vector.extract_strided_slice %60 {offsets = [0, 1, 0], sizes = [8, 8, 4], strides = [1, 1, 1]} : vector<10x10x4xf32> to vector<8x8x4xf32>
    %68 = vector.shape_cast %67 : vector<8x8x4xf32> to vector<64x4xf32>
    %c10 = arith.constant 10 : index
    %c0_41 = arith.constant 0 : index
    %c0_42 = arith.constant 0 : index
    %69 = vector.load %arg5[%c10, %c0_41, %c0_42] : memref<27x4x128xf32, #tpu.memory_space<vmem>>, vector<1x4x128xf32>
    %70 = vector.shape_cast %69 : vector<1x4x128xf32> to vector<4x128xf32>
    %cst_43 = arith.constant dense<0.000000e+00> : vector<64x128xf32>
    %71 = tpu.matmul %68, %70, %cst_43 {dimension_numbers = #tpu.dot_dimension_numbers<[1], [0], [0], [1], [0, 0, 1, 1], [], []>} : vector<64x4xf32>, vector<4x128xf32>, vector<64x128xf32> -> vector<64x128xf32>
    %72 = arith.addf %66, %71 : vector<64x128xf32>
    %73 = vector.extract_strided_slice %60 {offsets = [0, 2, 0], sizes = [8, 8, 4], strides = [1, 1, 1]} : vector<10x10x4xf32> to vector<8x8x4xf32>
    %74 = vector.shape_cast %73 : vector<8x8x4xf32> to vector<64x4xf32>
    %c11 = arith.constant 11 : index
    %c0_44 = arith.constant 0 : index
    %c0_45 = arith.constant 0 : index
    %75 = vector.load %arg5[%c11, %c0_44, %c0_45] : memref<27x4x128xf32, #tpu.memory_space<vmem>>, vector<1x4x128xf32>
    %76 = vector.shape_cast %75 : vector<1x4x128xf32> to vector<4x128xf32>
    %cst_46 = arith.constant dense<0.000000e+00> : vector<64x128xf32>
    %77 = tpu.matmul %74, %76, %cst_46 {dimension_numbers = #tpu.dot_dimension_numbers<[1], [0], [0], [1], [0, 0, 1, 1], [], []>} : vector<64x4xf32>, vector<4x128xf32>, vector<64x128xf32> -> vector<64x128xf32>
    %78 = arith.addf %72, %77 : vector<64x128xf32>
    %79 = vector.extract_strided_slice %60 {offsets = [1, 0, 0], sizes = [8, 8, 4], strides = [1, 1, 1]} : vector<10x10x4xf32> to vector<8x8x4xf32>
    %80 = vector.shape_cast %79 : vector<8x8x4xf32> to vector<64x4xf32>
    %c12 = arith.constant 12 : index
    %c0_47 = arith.constant 0 : index
    %c0_48 = arith.constant 0 : index
    %81 = vector.load %arg5[%c12, %c0_47, %c0_48] : memref<27x4x128xf32, #tpu.memory_space<vmem>>, vector<1x4x128xf32>
    %82 = vector.shape_cast %81 : vector<1x4x128xf32> to vector<4x128xf32>
    %cst_49 = arith.constant dense<0.000000e+00> : vector<64x128xf32>
    %83 = tpu.matmul %80, %82, %cst_49 {dimension_numbers = #tpu.dot_dimension_numbers<[1], [0], [0], [1], [0, 0, 1, 1], [], []>} : vector<64x4xf32>, vector<4x128xf32>, vector<64x128xf32> -> vector<64x128xf32>
    %84 = arith.addf %78, %83 : vector<64x128xf32>
    %85 = vector.extract_strided_slice %60 {offsets = [1, 1, 0], sizes = [8, 8, 4], strides = [1, 1, 1]} : vector<10x10x4xf32> to vector<8x8x4xf32>
    %86 = vector.shape_cast %85 : vector<8x8x4xf32> to vector<64x4xf32>
    %c13 = arith.constant 13 : index
    %c0_50 = arith.constant 0 : index
    %c0_51 = arith.constant 0 : index
    %87 = vector.load %arg5[%c13, %c0_50, %c0_51] : memref<27x4x128xf32, #tpu.memory_space<vmem>>, vector<1x4x128xf32>
    %88 = vector.shape_cast %87 : vector<1x4x128xf32> to vector<4x128xf32>
    %cst_52 = arith.constant dense<0.000000e+00> : vector<64x128xf32>
    %89 = tpu.matmul %86, %88, %cst_52 {dimension_numbers = #tpu.dot_dimension_numbers<[1], [0], [0], [1], [0, 0, 1, 1], [], []>} : vector<64x4xf32>, vector<4x128xf32>, vector<64x128xf32> -> vector<64x128xf32>
    %90 = arith.addf %84, %89 : vector<64x128xf32>
    %91 = vector.extract_strided_slice %60 {offsets = [1, 2, 0], sizes = [8, 8, 4], strides = [1, 1, 1]} : vector<10x10x4xf32> to vector<8x8x4xf32>
    %92 = vector.shape_cast %91 : vector<8x8x4xf32> to vector<64x4xf32>
    %c14 = arith.constant 14 : index
    %c0_53 = arith.constant 0 : index
    %c0_54 = arith.constant 0 : index
    %93 = vector.load %arg5[%c14, %c0_53, %c0_54] : memref<27x4x128xf32, #tpu.memory_space<vmem>>, vector<1x4x128xf32>
    %94 = vector.shape_cast %93 : vector<1x4x128xf32> to vector<4x128xf32>
    %cst_55 = arith.constant dense<0.000000e+00> : vector<64x128xf32>
    %95 = tpu.matmul %92, %94, %cst_55 {dimension_numbers = #tpu.dot_dimension_numbers<[1], [0], [0], [1], [0, 0, 1, 1], [], []>} : vector<64x4xf32>, vector<4x128xf32>, vector<64x128xf32> -> vector<64x128xf32>
    %96 = arith.addf %90, %95 : vector<64x128xf32>
    %97 = vector.extract_strided_slice %60 {offsets = [2, 0, 0], sizes = [8, 8, 4], strides = [1, 1, 1]} : vector<10x10x4xf32> to vector<8x8x4xf32>
    %98 = vector.shape_cast %97 : vector<8x8x4xf32> to vector<64x4xf32>
    %c15 = arith.constant 15 : index
    %c0_56 = arith.constant 0 : index
    %c0_57 = arith.constant 0 : index
    %99 = vector.load %arg5[%c15, %c0_56, %c0_57] : memref<27x4x128xf32, #tpu.memory_space<vmem>>, vector<1x4x128xf32>
    %100 = vector.shape_cast %99 : vector<1x4x128xf32> to vector<4x128xf32>
    %cst_58 = arith.constant dense<0.000000e+00> : vector<64x128xf32>
    %101 = tpu.matmul %98, %100, %cst_58 {dimension_numbers = #tpu.dot_dimension_numbers<[1], [0], [0], [1], [0, 0, 1, 1], [], []>} : vector<64x4xf32>, vector<4x128xf32>, vector<64x128xf32> -> vector<64x128xf32>
    %102 = arith.addf %96, %101 : vector<64x128xf32>
    %103 = vector.extract_strided_slice %60 {offsets = [2, 1, 0], sizes = [8, 8, 4], strides = [1, 1, 1]} : vector<10x10x4xf32> to vector<8x8x4xf32>
    %104 = vector.shape_cast %103 : vector<8x8x4xf32> to vector<64x4xf32>
    %c16 = arith.constant 16 : index
    %c0_59 = arith.constant 0 : index
    %c0_60 = arith.constant 0 : index
    %105 = vector.load %arg5[%c16, %c0_59, %c0_60] : memref<27x4x128xf32, #tpu.memory_space<vmem>>, vector<1x4x128xf32>
    %106 = vector.shape_cast %105 : vector<1x4x128xf32> to vector<4x128xf32>
    %cst_61 = arith.constant dense<0.000000e+00> : vector<64x128xf32>
    %107 = tpu.matmul %104, %106, %cst_61 {dimension_numbers = #tpu.dot_dimension_numbers<[1], [0], [0], [1], [0, 0, 1, 1], [], []>} : vector<64x4xf32>, vector<4x128xf32>, vector<64x128xf32> -> vector<64x128xf32>
    %108 = arith.addf %102, %107 : vector<64x128xf32>
    %109 = vector.extract_strided_slice %60 {offsets = [2, 2, 0], sizes = [8, 8, 4], strides = [1, 1, 1]} : vector<10x10x4xf32> to vector<8x8x4xf32>
    %110 = vector.shape_cast %109 : vector<8x8x4xf32> to vector<64x4xf32>
    %c17 = arith.constant 17 : index
    %c0_62 = arith.constant 0 : index
    %c0_63 = arith.constant 0 : index
    %111 = vector.load %arg5[%c17, %c0_62, %c0_63] : memref<27x4x128xf32, #tpu.memory_space<vmem>>, vector<1x4x128xf32>
    %112 = vector.shape_cast %111 : vector<1x4x128xf32> to vector<4x128xf32>
    %cst_64 = arith.constant dense<0.000000e+00> : vector<64x128xf32>
    %113 = tpu.matmul %110, %112, %cst_64 {dimension_numbers = #tpu.dot_dimension_numbers<[1], [0], [0], [1], [0, 0, 1, 1], [], []>} : vector<64x4xf32>, vector<4x128xf32>, vector<64x128xf32> -> vector<64x128xf32>
    %114 = arith.addf %108, %113 : vector<64x128xf32>
    %c0_65 = arith.constant 0 : index
    %c0_66 = arith.constant 0 : index
    %c0_67 = arith.constant 0 : index
    %c0_68 = arith.constant 0 : index
    %c0_69 = arith.constant 0 : index
    %115 = vector.load %arg4[%c0_65, %c0_66, %c0_67, %c0_68, %c0_69] : memref<1x1x10x10x4xf32, #tpu.memory_space<vmem>>, vector<1x1x10x10x4xf32>
    %116 = vector.shape_cast %115 : vector<1x1x10x10x4xf32> to vector<10x10x4xf32>
    %117 = vector.extract_strided_slice %116 {offsets = [0, 0, 0], sizes = [8, 8, 4], strides = [1, 1, 1]} : vector<10x10x4xf32> to vector<8x8x4xf32>
    %118 = vector.shape_cast %117 : vector<8x8x4xf32> to vector<64x4xf32>
    %c18 = arith.constant 18 : index
    %c0_70 = arith.constant 0 : index
    %c0_71 = arith.constant 0 : index
    %119 = vector.load %arg5[%c18, %c0_70, %c0_71] : memref<27x4x128xf32, #tpu.memory_space<vmem>>, vector<1x4x128xf32>
    %120 = vector.shape_cast %119 : vector<1x4x128xf32> to vector<4x128xf32>
    %cst_72 = arith.constant dense<0.000000e+00> : vector<64x128xf32>
    %121 = tpu.matmul %118, %120, %cst_72 {dimension_numbers = #tpu.dot_dimension_numbers<[1], [0], [0], [1], [0, 0, 1, 1], [], []>} : vector<64x4xf32>, vector<4x128xf32>, vector<64x128xf32> -> vector<64x128xf32>
    %122 = arith.addf %114, %121 : vector<64x128xf32>
    %123 = vector.extract_strided_slice %116 {offsets = [0, 1, 0], sizes = [8, 8, 4], strides = [1, 1, 1]} : vector<10x10x4xf32> to vector<8x8x4xf32>
    %124 = vector.shape_cast %123 : vector<8x8x4xf32> to vector<64x4xf32>
    %c19 = arith.constant 19 : index
    %c0_73 = arith.constant 0 : index
    %c0_74 = arith.constant 0 : index
    %125 = vector.load %arg5[%c19, %c0_73, %c0_74] : memref<27x4x128xf32, #tpu.memory_space<vmem>>, vector<1x4x128xf32>
    %126 = vector.shape_cast %125 : vector<1x4x128xf32> to vector<4x128xf32>
    %cst_75 = arith.constant dense<0.000000e+00> : vector<64x128xf32>
    %127 = tpu.matmul %124, %126, %cst_75 {dimension_numbers = #tpu.dot_dimension_numbers<[1], [0], [0], [1], [0, 0, 1, 1], [], []>} : vector<64x4xf32>, vector<4x128xf32>, vector<64x128xf32> -> vector<64x128xf32>
    %128 = arith.addf %122, %127 : vector<64x128xf32>
    %129 = vector.extract_strided_slice %116 {offsets = [0, 2, 0], sizes = [8, 8, 4], strides = [1, 1, 1]} : vector<10x10x4xf32> to vector<8x8x4xf32>
    %130 = vector.shape_cast %129 : vector<8x8x4xf32> to vector<64x4xf32>
    %c20 = arith.constant 20 : index
    %c0_76 = arith.constant 0 : index
    %c0_77 = arith.constant 0 : index
    %131 = vector.load %arg5[%c20, %c0_76, %c0_77] : memref<27x4x128xf32, #tpu.memory_space<vmem>>, vector<1x4x128xf32>
    %132 = vector.shape_cast %131 : vector<1x4x128xf32> to vector<4x128xf32>
    %cst_78 = arith.constant dense<0.000000e+00> : vector<64x128xf32>
    %133 = tpu.matmul %130, %132, %cst_78 {dimension_numbers = #tpu.dot_dimension_numbers<[1], [0], [0], [1], [0, 0, 1, 1], [], []>} : vector<64x4xf32>, vector<4x128xf32>, vector<64x128xf32> -> vector<64x128xf32>
    %134 = arith.addf %128, %133 : vector<64x128xf32>
    %135 = vector.extract_strided_slice %116 {offsets = [1, 0, 0], sizes = [8, 8, 4], strides = [1, 1, 1]} : vector<10x10x4xf32> to vector<8x8x4xf32>
    %136 = vector.shape_cast %135 : vector<8x8x4xf32> to vector<64x4xf32>
    %c21 = arith.constant 21 : index
    %c0_79 = arith.constant 0 : index
    %c0_80 = arith.constant 0 : index
    %137 = vector.load %arg5[%c21, %c0_79, %c0_80] : memref<27x4x128xf32, #tpu.memory_space<vmem>>, vector<1x4x128xf32>
    %138 = vector.shape_cast %137 : vector<1x4x128xf32> to vector<4x128xf32>
    %cst_81 = arith.constant dense<0.000000e+00> : vector<64x128xf32>
    %139 = tpu.matmul %136, %138, %cst_81 {dimension_numbers = #tpu.dot_dimension_numbers<[1], [0], [0], [1], [0, 0, 1, 1], [], []>} : vector<64x4xf32>, vector<4x128xf32>, vector<64x128xf32> -> vector<64x128xf32>
    %140 = arith.addf %134, %139 : vector<64x128xf32>
    %141 = vector.extract_strided_slice %116 {offsets = [1, 1, 0], sizes = [8, 8, 4], strides = [1, 1, 1]} : vector<10x10x4xf32> to vector<8x8x4xf32>
    %142 = vector.shape_cast %141 : vector<8x8x4xf32> to vector<64x4xf32>
    %c22 = arith.constant 22 : index
    %c0_82 = arith.constant 0 : index
    %c0_83 = arith.constant 0 : index
    %143 = vector.load %arg5[%c22, %c0_82, %c0_83] : memref<27x4x128xf32, #tpu.memory_space<vmem>>, vector<1x4x128xf32>
    %144 = vector.shape_cast %143 : vector<1x4x128xf32> to vector<4x128xf32>
    %cst_84 = arith.constant dense<0.000000e+00> : vector<64x128xf32>
    %145 = tpu.matmul %142, %144, %cst_84 {dimension_numbers = #tpu.dot_dimension_numbers<[1], [0], [0], [1], [0, 0, 1, 1], [], []>} : vector<64x4xf32>, vector<4x128xf32>, vector<64x128xf32> -> vector<64x128xf32>
    %146 = arith.addf %140, %145 : vector<64x128xf32>
    %147 = vector.extract_strided_slice %116 {offsets = [1, 2, 0], sizes = [8, 8, 4], strides = [1, 1, 1]} : vector<10x10x4xf32> to vector<8x8x4xf32>
    %148 = vector.shape_cast %147 : vector<8x8x4xf32> to vector<64x4xf32>
    %c23 = arith.constant 23 : index
    %c0_85 = arith.constant 0 : index
    %c0_86 = arith.constant 0 : index
    %149 = vector.load %arg5[%c23, %c0_85, %c0_86] : memref<27x4x128xf32, #tpu.memory_space<vmem>>, vector<1x4x128xf32>
    %150 = vector.shape_cast %149 : vector<1x4x128xf32> to vector<4x128xf32>
    %cst_87 = arith.constant dense<0.000000e+00> : vector<64x128xf32>
    %151 = tpu.matmul %148, %150, %cst_87 {dimension_numbers = #tpu.dot_dimension_numbers<[1], [0], [0], [1], [0, 0, 1, 1], [], []>} : vector<64x4xf32>, vector<4x128xf32>, vector<64x128xf32> -> vector<64x128xf32>
    %152 = arith.addf %146, %151 : vector<64x128xf32>
    %153 = vector.extract_strided_slice %116 {offsets = [2, 0, 0], sizes = [8, 8, 4], strides = [1, 1, 1]} : vector<10x10x4xf32> to vector<8x8x4xf32>
    %154 = vector.shape_cast %153 : vector<8x8x4xf32> to vector<64x4xf32>
    %c24 = arith.constant 24 : index
    %c0_88 = arith.constant 0 : index
    %c0_89 = arith.constant 0 : index
    %155 = vector.load %arg5[%c24, %c0_88, %c0_89] : memref<27x4x128xf32, #tpu.memory_space<vmem>>, vector<1x4x128xf32>
    %156 = vector.shape_cast %155 : vector<1x4x128xf32> to vector<4x128xf32>
    %cst_90 = arith.constant dense<0.000000e+00> : vector<64x128xf32>
    %157 = tpu.matmul %154, %156, %cst_90 {dimension_numbers = #tpu.dot_dimension_numbers<[1], [0], [0], [1], [0, 0, 1, 1], [], []>} : vector<64x4xf32>, vector<4x128xf32>, vector<64x128xf32> -> vector<64x128xf32>
    %158 = arith.addf %152, %157 : vector<64x128xf32>
    %159 = vector.extract_strided_slice %116 {offsets = [2, 1, 0], sizes = [8, 8, 4], strides = [1, 1, 1]} : vector<10x10x4xf32> to vector<8x8x4xf32>
    %160 = vector.shape_cast %159 : vector<8x8x4xf32> to vector<64x4xf32>
    %c25 = arith.constant 25 : index
    %c0_91 = arith.constant 0 : index
    %c0_92 = arith.constant 0 : index
    %161 = vector.load %arg5[%c25, %c0_91, %c0_92] : memref<27x4x128xf32, #tpu.memory_space<vmem>>, vector<1x4x128xf32>
    %162 = vector.shape_cast %161 : vector<1x4x128xf32> to vector<4x128xf32>
    %cst_93 = arith.constant dense<0.000000e+00> : vector<64x128xf32>
    %163 = tpu.matmul %160, %162, %cst_93 {dimension_numbers = #tpu.dot_dimension_numbers<[1], [0], [0], [1], [0, 0, 1, 1], [], []>} : vector<64x4xf32>, vector<4x128xf32>, vector<64x128xf32> -> vector<64x128xf32>
    %164 = arith.addf %158, %163 : vector<64x128xf32>
    %165 = vector.extract_strided_slice %116 {offsets = [2, 2, 0], sizes = [8, 8, 4], strides = [1, 1, 1]} : vector<10x10x4xf32> to vector<8x8x4xf32>
    %166 = vector.shape_cast %165 : vector<8x8x4xf32> to vector<64x4xf32>
    %c26 = arith.constant 26 : index
    %c0_94 = arith.constant 0 : index
    %c0_95 = arith.constant 0 : index
    %167 = vector.load %arg5[%c26, %c0_94, %c0_95] : memref<27x4x128xf32, #tpu.memory_space<vmem>>, vector<1x4x128xf32>
    %168 = vector.shape_cast %167 : vector<1x4x128xf32> to vector<4x128xf32>
    %cst_96 = arith.constant dense<0.000000e+00> : vector<64x128xf32>
    %169 = tpu.matmul %166, %168, %cst_96 {dimension_numbers = #tpu.dot_dimension_numbers<[1], [0], [0], [1], [0, 0, 1, 1], [], []>} : vector<64x4xf32>, vector<4x128xf32>, vector<64x128xf32> -> vector<64x128xf32>
    %170 = arith.addf %164, %169 : vector<64x128xf32>
    %171 = vector.extract_strided_slice %170 {offsets = [0, 0], sizes = [64, 4], strides = [1, 1]} : vector<64x128xf32> to vector<64x4xf32>
    %c0_97 = arith.constant 0 : index
    %c0_98 = arith.constant 0 : index
    %c0_99 = arith.constant 0 : index
    %c0_100 = arith.constant 0 : index
    %172 = vector.load %arg7[%c0_97, %c0_98, %c0_99, %c0_100] : memref<1x1x64x4xf32, #tpu.memory_space<vmem>>, vector<1x1x64x4xf32>
    %173 = vector.shape_cast %172 : vector<1x1x64x4xf32> to vector<64x4xf32>
    %174 = vector.shape_cast %171 : vector<64x4xf32> to vector<1x1x64x4xf32>
    tpu.vector_store %arg7[%c0_97, %c0_98, %c0_99, %c0_100], %174 {strides = array<i32>} : memref<1x1x64x4xf32, #tpu.memory_space<vmem>>, vector<1x1x64x4xf32>,
    return
  }
  func.func @transform_0(%arg0: i32, %arg1: i32) -> (i32, i32, i32, i32, i32) {
    %c0_i32 = arith.constant 0 : i32
    %0 = arith.addi %arg1, %c0_i32 : i32
    %c0_i32_0 = arith.constant 0 : i32
    %c0_i32_1 = arith.constant 0 : i32
    %c0_i32_2 = arith.constant 0 : i32
    %c0_i32_3 = arith.constant 0 : i32
    return %arg0, %0, %c0_i32_0, %c0_i32_1, %c0_i32_2 : i32, i32, i32, i32, i32
  }
  func.func @transform_1(%arg0: i32, %arg1: i32) -> (i32, i32, i32, i32, i32) {
    %c1_i32 = arith.constant 1 : i32
    %0 = arith.addi %arg1, %c1_i32 : i32
    %c0_i32 = arith.constant 0 : i32
    %c0_i32_0 = arith.constant 0 : i32
    %c0_i32_1 = arith.constant 0 : i32
    %c0_i32_2 = arith.constant 0 : i32
    return %arg0, %0, %c0_i32, %c0_i32_0, %c0_i32_1 : i32, i32, i32, i32, i32
  }
  func.func @transform_2(%arg0: i32, %arg1: i32) -> (i32, i32, i32, i32, i32) {
    %c2_i32 = arith.constant 2 : i32
    %0 = arith.addi %arg1, %c2_i32 : i32
    %c0_i32 = arith.constant 0 : i32
    %c0_i32_0 = arith.constant 0 : i32
    %c0_i32_1 = arith.constant 0 : i32
    %c0_i32_2 = arith.constant 0 : i32
    return %arg0, %0, %c0_i32, %c0_i32_0, %c0_i32_1 : i32, i32, i32, i32, i32
  }
  func.func @transform_3(%arg0: i32, %arg1: i32) -> (i32, i32, i32) {
    %c0_i32 = arith.constant 0 : i32
    %c0_i32_0 = arith.constant 0 : i32
    %c0_i32_1 = arith.constant 0 : i32
    %c0_i32_2 = arith.constant 0 : i32
    return %c0_i32, %c0_i32_0, %c0_i32_1 : i32, i32, i32
  }
  func.func @transform_4(%arg0: i32, %arg1: i32) -> (i32, i32) {
    %c0_i32 = arith.constant 0 : i32
    %c0_i32_0 = arith.constant 0 : i32
    %c0_i32_1 = arith.constant 0 : i32
    return %c0_i32, %c0_i32_0 : i32, i32
  }
  func.func @transform_5(%arg0: i32, %arg1: i32) -> (i32, i32, i32, i32) {
    %c0_i32 = arith.constant 0 : i32
    %c0_i32_0 = arith.constant 0 : i32
    %c0_i32_1 = arith.constant 0 : i32
    return %arg0, %arg1, %c0_i32, %c0_i32_0 : i32, i32, i32, i32
  }
}

</mosaic_0001>

<bundles_post_ra>
// kernel: tpu_custom_call.1
= control target key start
LH: loop header
LB: loop body
LE: loop exit
PB: predicated region body
PF: predicated region fallthrough
CT: control target
= control target key end

     0   :  { %s5401_s18 = smov 0   ;;  %s5403_s19 = smov 0   ;;  %s6492_s0 = inlined_call_operand.vmem [shape: f32[2,10,10,10,4], index: 0, kind: input, shape index: {}]   ;;  %s6493_s1 = inlined_call_operand.vmem [shape: f32[2,10,10,10,4], index: 1, kind: input, shape index: {}]   ;;  %s6494_s2 = inlined_call_operand.vmem [shape: f32[2,10,10,10,4], index: 2, kind: input, shape index: {}]   ;;  %s6495_s3 = inlined_call_operand.vmem [shape: f32[27,4,128], index: 3, kind: input, shape index: {}]   ;;  %s6496_s4 = inlined_call_operand.vmem [shape: f32[1,128], index: 4, kind: input, shape index: {}]   ;;  %s6497_s5 = inlined_call_operand.vmem [shape: f32[2,8,64,4], index: 5, kind: output, shape index: {}]  }
   0x1   :  { %s5405_s20 = smov 0   ;;  %s5407_s21 = smov 0  }
   0x2   :  { %s5409_s22 = smov 0  }
   0x3 LB: > { %s24_s23 = sadd.s32 1, %s5361_s20  ;;  %s27_s24 = sadd.s32 1, %s5365_s21  ;;  %s5369_s22 = sphi %s5409_s22, %s15_s22   ;;  %s5365_s21 = sphi %s5407_s21, %s6539_s21   ;;  %s5361_s20 = sphi %s5405_s20, %s6538_s20   ;;  %s5357_s19 = sphi %s5403_s19, %s6537_s19   ;;  %s5353_s18 = sphi %s5401_s18, %s6536_s18  }
   0x4   : > { %p25_p0 = scmp.ge.s32.totalorder %s24_s23, 8  ;;  %p4168_p1 = scmp.ge.s32.totalorder %s5369_s22, 1 }
   0x5   : > { %p247_p2 = scmp.lt.s32.totalorder %s5369_s22, 17 }
   0x6   : > { %s6541_s23 = smov (%p25_p0, %s24_s23), 0  ;;  %s6543_s24 = smov (!%p25_p0, %s27_s24), %s5365_s21 }
   0x7   : > { %p248_p3 = pnand %p4168_p1, %p247_p2  ;;  %p29_p4 = scmp.ge.s32.totalorder %s6543_s24, 2 }
   0x9   : > { %s6545_s24 = smov (%p29_p4, %s6543_s24), 0  ;;  %251 = sbr.rel (%p248_p3) target bundleno = 462 (0x1ce), region = 40 }
  0x10   : > { %v370_v0 = vld [vmem:[%s6495_s3] sm:$0xf]  ;;  %vm396_vm0 = vcmask 1043456   ;;  %p303_p5 = scmp.lt.s32.totalorder %s5357_s19, 1  ;;  %p305_p6 = scmp.lt.s32.totalorder %s5353_s18, 9  ;;  %vm371_vm1 = vcmask 31744  }
  0x11   : > { %4690 = vmatprep.subr.msk.mxu1 %vm396_vm0, %v370_v0  ;;  %v4185_v1 = vld [vmem:[%s6495_s3 + $0x4] sm:$0xf]  ;;  %v4305_v2 = vld [vmem:[%s6495_s3 + $0x34] sm:$0xf]  ;;  %s312_s6 = sadd.s32 1, %s5353_s18  ;;  %vm521_vm2 = vcmask 1046528  }
  0x12   : > { %4691 = vmatpush3.msk.msra.mxu1 %vm396_vm0, %v370_v0  ;;  %s6547_s19 = smov (!%p303_p5, %s5357_s19), 1  ;;  %4872 = vmatprep.subr.msk.mxu0 %vm396_vm0, %v4305_v2  ;;  %v5452_v3 = vld [vmem:[%s6495_s3 + $0x38] sm:$0xf]  ;;  %p315_p7 = scmp.lt.s32.totalorder %s312_s6, 9  ;;  %v5483_v7 = vld [vmem:[%s6495_s3 + $0x8] sm:$0xf] }
  0x13   : > { %s306_s9 = scalar_select %p305_p6, %s5353_s18, 9  ;;  %4704 = vmatprep.subr.msk.mxu1 %vm396_vm0, %v4185_v1  ;;  %4873 = vmatpush3.msk.msra.mxu0 %vm396_vm0, %v4305_v2  ;;  %v5523_v22 = vld [vmem:[%s6495_s3 + $0x3c] sm:$0xf]  ;;  %vm680_vm3 = vcmask 1045504   ;;  %v5616_v58 = vld [vmem:[%s6495_s3 + $0x40] sm:$0xf] }
  0x14   : > { %s5458_s10 = smul.u32 200, %s6547_s19  ;;  %4886 = vmatprep.subr.msk.mxu0 %vm396_vm0, %v5452_v3  ;;  %s6549_s6 = smov (!%p315_p7, %s312_s6), 9 }
  0x15   : > { %s5286_s11 = smul.u32 20, %s306_s9  ;;  %p336_p9 = scmp.lt.s32.totalorder %s5353_s18, 7 }
  0x16   : > { %s5288_s14 = smul.u32 20, %s6549_s6 }
  0x17   : > { %s309_s12 = sadd.s32 %s5458_s10, %s5286_s11 }
  0x18   : > { %s4169_s13 = sshll.u32 %s309_s12, 3  ;;  %s319_s25 = sadd.s32 %s5288_s14, %s5458_s10 }
  0x19   : > { %s5466_s17 = scalar_lea.vmem %s6492_s0, %s4169_s13  ;;  %s4170_s26 = sshll.u32 %s319_s25, 3 }
  0x1a   : > { %v5469_v4 = vld [vmem:[%s5466_s17] sm:$0xff]  ;;  %v5472_v5 = vld [vmem:[%s5466_s17 + $0x10] sm:$0xff]  ;;  %s5490_s6 = scalar_lea.vmem %s6493_s1, %s4170_s26  ;;  %v5548_v32 = vld [vmem:[%s5466_s17 + $0x8] sm:$0x3]  ;;  %s323_s14 = sadd.s32 2, %s5353_s18 }
  0x1b   : > { %v5475_v6 = vld [vmem:[%s5466_s17 + $0x20] sm:$0xff]  ;;  %4692 = vmatprep.mubr.msk.f32.mxu1 %vm371_vm1, %v5469_v4  ;;  %v5493_v8 = vld [vmem:[%s5466_s17 + $0x30] sm:$0xff]  ;;  %v1578_v10 = vld [vmem:[%s5490_s6 + $0x18] sm:$0x3]  ;;  %v522_v33 = vrot.slane %v5469_v4, 1  ;;  %v523_v36 = vrot.slane %v5548_v32, 1 }
  0x1c   : > { %4693 = vmatmul.mubr.msk.f32.vlgmr.msra.gmra.mrb[0].mxu1 %vm371_vm1, %v5472_v5  ;;  %v5499_v9 = vld [vmem:[%s5490_s6 + $0x10] sm:$0xff]  ;;  %v5503_v11 = vld [vmem:[%s5490_s6 + $0x20] sm:$0xff]  ;;  %v1749_v13 = vrot.slane %v1578_v10, 1  ;;  %v1580_v14 = vld [vmem:[%s5490_s6 + $0x28] sm:$0x3]  ;;  %v1907_v17 = vrot.slane %v1578_v10, 2 }
  0x1d   : > { %4705 = vmatpush3.msk.msra.mxu1 %vm396_vm0, %v4185_v1  ;;  %4695 = vmatprep.mubr.msk.f32.mxu1 %vm371_vm1, %v5475_v6  ;;  %v1748_v12 = vrot.slane %v5499_v9, 1  ;;  %v1751_v15 = vrot.slane %v5503_v11, 1  ;;  %v5509_v16 = vld [vmem:[%s5466_s17 + $0x40] sm:$0xff]  ;;  %v1752_v18 = vrot.slane %v1580_v14, 1  ;;  %v5514_v19 = vld [vmem:[%s5490_s6 + $0x30] sm:$0xff]  ;;  %v1906_v31 = vrot.slane %v5499_v9, 2 }
  0x1e   : > { %4718 = vmatprep.subr.msk.mxu1 %vm396_vm0, %v5483_v7  ;;  %v1582_v20 = vld [vmem:[%s5490_s6 + $0x38] sm:$0x3]  ;;  %v5518_v21 = vld [vmem:[%s5490_s6 + $0x40] sm:$0xff]  ;;  %v1754_v24 = vrot.slane %v5514_v19, 1  ;;  %v5532_v26 = vld [vmem:[%s5490_s6 + $0x48] sm:$0x3]  ;;  %v524_v50 = vsel %vm521_vm2, %v522_v33, %v523_v36 }
  0x1f   : > { %v5526_v23 = vsel %vm521_vm2, %v1748_v12, %v1749_v13  ;;  %v1755_v25 = vrot.slane %v1582_v20, 1  ;;  %v1757_v27 = vrot.slane %v5518_v21, 1  ;;  %v5538_v28 = vsel %vm521_vm2, %v1751_v15, %v1752_v18  ;;  %v5543_v29 = vld [vmem:[%s5466_s17 + $0x50] sm:$0xff]  ;;  %v5557_v35 = vld [vmem:[%s5466_s17 + $0x60] sm:$0xff]  ;;  %v5561_v37 = vld [vmem:[%s5466_s17 + $0x18] sm:$0x3] }
  0x20   : > { %4696 = vmatmul.mubr.msk.f32.gmra.mrb[2].mxu1 %vm371_vm1, %v5493_v8  ;;  %4874 = vmatprep.mubr.msk.f32.mxu0 %vm371_vm1, %v5526_v23  ;;  %v1758_v30 = vrot.slane %v5532_v26, 1  ;;  %v1910_v38 = vrot.slane %v1580_v14, 2  ;;  %v1909_v40 = vrot.slane %v5503_v11, 2  ;;  %v5572_v41 = vld [vmem:[%s5466_s17 + $0x28] sm:$0x3]  ;;  %v5577_v42 = vsel %vm680_vm3, %v1906_v31, %v1907_v17  ;;  %v5586_v46 = vld [vmem:[%s5466_s17 + $0x70] sm:$0xff] }
  0x21   : > { %4698 = vmatprep.mubr.msk.f32.mxu1 %vm371_vm1, %v5509_v16  ;;  %4875 = vmatmul.mubr.msk.f32.vlgmr.msra.gmra.mrb[0].mxu0 %vm371_vm1, %v5538_v28  ;;  %v5554_v34 = vsel %vm521_vm2, %v1754_v24, %v1755_v25  ;;  %6512 = vst [vmem:[#allocation2_spill] sm:$0xff] %v5577_v42  ;;  %v1912_v43 = vrot.slane %v5514_v19, 2  ;;  %v1913_v44 = vrot.slane %v1582_v20, 2  ;;  %v525_v45 = vrot.slane %v5472_v5, 1  ;;  %v5590_v48 = vld [vmem:[%s5490_s6 + $0x50] sm:$0xff]  ;;  %v5626_v62 = vld [vmem:[%s5490_s6 + $0x60] sm:$0xff] }
  0x22   : > { %4887 = vmatpush3.msk.msra.mxu0 %vm396_vm0, %v5452_v3  ;;  %4877 = vmatprep.mubr.msk.f32.mxu0 %vm371_vm1, %v5554_v34  ;;  %v5568_v39 = vsel %vm521_vm2, %v1757_v27, %v1758_v30  ;;  %v526_v47 = vrot.slane %v5561_v37, 1  ;;  %v5593_v49 = vld [vmem:[%s5490_s6 + $0x58] sm:$0x3]  ;;  %v528_v51 = vrot.slane %v5475_v6, 1  ;;  %v529_v52 = vrot.slane %v5572_v41, 1  ;;  %v5638_v3 = vld [vmem:[%s5490_s6 + $0x70] sm:$0xff] }
  0x23   : > { %4900 = vmatprep.subr.msk.mxu0 %vm396_vm0, %v5523_v22  ;;  %v5601_v53 = vld [vmem:[%s5466_s17 + $0x38] sm:$0x3]  ;;  %v5606_v54 = vsel %vm680_vm3, %v1909_v40, %v1910_v38  ;;  %v1915_v55 = vrot.slane %v5518_v21, 2  ;;  %v1916_v56 = vrot.slane %v5532_v26, 2  ;;  %v5611_v57 = vld [vmem:[%s5466_s17 + $0x48] sm:$0x3]  ;;  %v5621_v59 = vsel %vm680_vm3, %v1912_v43, %v1913_v44 }
  0x24   : > { %4699 = vmatmul.mubr.msk.f32.gmra.mrb[4].mxu1 %vm371_vm1, %v5543_v29  ;;  %6513 = vst [vmem:[#allocation3_spill] sm:$0xff] %v5606_v54  ;;  %6514 = vst [vmem:[#allocation4_spill] sm:$0xff] %v5621_v59  ;;  %v1918_v60 = vrot.slane %v5590_v48, 2  ;;  %v1919_v61 = vrot.slane %v5593_v49, 2  ;;  %v5629_v63 = vld [vmem:[%s5490_s6 + $0x68] sm:$0x3]  ;;  %v5633_v0 = vsel %vm521_vm2, %v525_v45, %v526_v47  ;;  %v5646_v12 = vsel %vm521_vm2, %v528_v51, %v529_v52 }
  0x25   : > { %4701 = vmatprep.mubr.msk.f32.mxu1 %vm371_vm1, %v5557_v35  ;;  %4878 = vmatmul.mubr.msk.f32.gmra.mrb[2].mxu0 %vm371_vm1, %v5568_v39  ;;  %v531_v1 = vrot.slane %v5493_v8, 1  ;;  %v532_v2 = vrot.slane %v5601_v53, 1  ;;  %v5641_v10 = vld [vmem:[%s5490_s6 + $0x78] sm:$0x3]  ;;  %v534_v13 = vrot.slane %v5509_v16, 1  ;;  %v535_v14 = vrot.slane %v5611_v57, 1 }
  0x26   : > { %4888 = vmatprep.mubr.msk.f32.mxu0 %vm371_vm1, %v5577_v42  ;;  %v5651_v15 = vld [vmem:[%s5466_s17 + $0x58] sm:$0x3]  ;;  %v5658_v17 = vsel %vm680_vm3, %v1915_v55, %v1916_v56  ;;  %v1921_v18 = vrot.slane %v5626_v62, 2  ;;  %v1922_v20 = vrot.slane %v5629_v63, 2  ;;  %v5663_v24 = vld [vmem:[%s5466_s17 + $0x68] sm:$0x3] }
  0x27   : > { %6515 = vst [vmem:[#allocation5_spill] sm:$0xff] %v5658_v17  ;;  %v5668_v25 = vld [vmem:[%s6495_s3 + $0xc] sm:$0xf]  ;;  %v1924_v26 = vrot.slane %v5638_v3, 2  ;;  %v1925_v27 = vrot.slane %v5641_v10, 2  ;;  %v5678_v30 = vld [vmem:[%s5490_s6 + $0x80] sm:$0xff]  ;;  %v5691_v33 = vsel %vm521_vm2, %v531_v1, %v532_v2  ;;  %v5698_v40 = vsel %vm521_vm2, %v534_v13, %v535_v14 }
  0x28   : > { %4702 = vmatmul.mubr.msk.f32.gmra.mrb[6].mxu1 %vm371_vm1, %v5586_v46  ;;  %6517 = vst [vmem:[#allocation7_spill] sm:$0xff] %v5678_v30  ;;  %v5681_v31 = vld [vmem:[%s5490_s6 + $0x88] sm:$0x3]  ;;  %v537_v36 = vrot.slane %v5543_v29, 1  ;;  %v538_v38 = vrot.slane %v5651_v15, 1  ;;  %v540_v43 = vrot.slane %v5557_v35, 1  ;;  %v5710_v45 = vsel %vm680_vm3, %v1921_v18, %v1922_v20 }
  0x29   : > { %4706 = vmatprep.mubr.msk.f32.mxu1 %vm371_vm1, %v524_v50  ;;  %4889 = vmatmul.mubr.msk.f32.vlgmr.msra.gmra.mrb[0].mxu0 %vm371_vm1, %v5606_v54  ;;  %v5703_v44 = vld [vmem:[%s5466_s17 + $0x78] sm:$0x3]  ;;  %6518 = vst [vmem:[#allocation8_spill] sm:$0xff] %v5710_v45  ;;  %v2306_v47 = vrot.slane %v5678_v30, 2  ;;  %v2307_v50 = vrot.slane %v5681_v31, 2  ;;  %p326_p8 = scmp.lt.s32.totalorder %s323_s14, 9  ;;  %v5717_v51 = vsel %vm680_vm3, %v1924_v26, %v1925_v27 }
  0x2a   : > { %4901 = vmatpush3.msk.msra.mxu0 %vm396_vm0, %v5523_v22  ;;  %4891 = vmatprep.mubr.msk.f32.mxu0 %vm371_vm1, %v5621_v59  ;;  %v5673_v22 = vsel %vm680_vm3, %v1918_v60, %v1919_v61  ;;  %6519 = vst [vmem:[#allocation9_spill] sm:$0xff] %v5717_v51  ;;  %v5722_v52 = vsel %vm521_vm2, %v537_v36, %v538_v38  ;;  %v543_v55 = vrot.slane %v5586_v46, 1  ;;  %v544_v56 = vrot.slane %v5703_v44, 1  ;;  %s6553_s18 = smov (!%p336_p9, %s5353_s18), 7  ;;  %s4173_s13 = sshll.u32 %s6547_s19, 6 }
  0x2b   : > { %6516 = vst [vmem:[#allocation6_spill] sm:$0xff] %v5673_v22  ;;  %4914 = vmatprep.subr.msk.mxu0 %vm396_vm0, %v5616_v58  ;;  %v681_v60 = vrot.slane %v5469_v4, 2  ;;  %v682_v1 = vrot.slane %v5548_v32, 2  ;;  %v5736_v2 = vsel %vm680_vm3, %v2306_v47, %v2307_v50  ;;  %s6551_s14 = smov (!%p326_p8, %s323_s14), 9  ;;  %v684_v4 = vrot.slane %v5472_v5, 2 }
  0x2c   : > { %4707 = vmatmul.mubr.msk.f32.vlgmr.msra.gmra.mrb[0].mxu1 %vm371_vm1, %v5633_v0  ;;  %v5744_v13 = vsel %vm521_vm2, %v543_v55, %v544_v56  ;;  %v685_v32 = vrot.slane %v5561_v37, 2  ;;  %v687_v18 = vrot.slane %v5475_v6, 2  ;;  %v688_v20 = vrot.slane %v5572_v41, 2  ;;  %s5289_s15 = smul.u32 20, %s6551_s14  ;;  %v4345_v41 = vld [vmem:[%s6495_s3 + $0x44] sm:$0xf] }
  0x2d   : > { %4719 = vmatpush3.msk.msra.mxu1 %vm396_vm0, %v5483_v7  ;;  %4709 = vmatprep.mubr.msk.f32.mxu1 %vm371_vm1, %v5646_v12  ;;  %v541_v7 = vrot.slane %v5663_v24, 1  ;;  %v683_v14 = vsel %vm680_vm3, %v681_v60, %v682_v1  ;;  %v690_v26 = vrot.slane %v5493_v8, 2  ;;  %v691_v27 = vrot.slane %v5601_v53, 2  ;;  %v4215_v53 = vld [vmem:[%s6495_s3 + $0x10] sm:$0xf] }
  0x2e   : > { %4892 = vmatmul.mubr.msk.f32.gmra.mrb[2].mxu0 %vm371_vm1, %v5658_v17  ;;  %4732 = vmatprep.subr.msk.mxu1 %vm396_vm0, %v5668_v25  ;;  %v5758_v37 = vsel %vm680_vm3, %v684_v4, %v685_v32  ;;  %v5768_v36 = vsel %vm680_vm3, %v687_v18, %v688_v20  ;;  %v693_v38 = vrot.slane %v5509_v16, 2  ;;  %s330_s28 = sadd.s32 %s5289_s15, %s5458_s10  ;;  %v699_v50 = vrot.slane %v5557_v35, 2 }
  0x2f   : > { %4894 = vmatprep.mubr.msk.f32.mxu0 %vm371_vm1, %v5673_v22  ;;  %v5730_v61 = vsel %vm521_vm2, %v540_v43, %v541_v7  ;;  %v694_v43 = vrot.slane %v5611_v57, 2  ;;  %v5788_v57 = vsel %vm680_vm3, %v690_v26, %v691_v27  ;;  %v697_v7 = vrot.slane %v5651_v15, 2  ;;  %s4171_s10 = sshll.u32 %s330_s28, 3 }
  0x30   : > { %4710 = vmatmul.mubr.msk.f32.gmra.mrb[2].mxu1 %vm371_vm1, %v5691_v33  ;;  %v702_v55 = vrot.slane %v5586_v46, 2  ;;  %v703_v56 = vrot.slane %v5703_v44, 2  ;;  %s5814_s7 = scalar_lea.vmem %s6494_s2, %s4171_s10  ;;  %v5828_v44 = vld [vmem:[%s5490_s6 + $0x90] sm:$0xff]  ;;  %v1760_v26 = vrot.slane %v5590_v48, 1  ;;  %v1761_v27 = vrot.slane %v5593_v49, 1 }
  0x31   : > { %4712 = vmatprep.mubr.msk.f32.mxu1 %vm371_vm1, %v5698_v40  ;;  %v5795_v47 = vsel %vm680_vm3, %v693_v38, %v694_v43  ;;  %v5822_v60 = vld [vmem:[%s5814_s7 + $0x80] sm:$0xff]  ;;  %v2814_v1 = vld [vmem:[%s5814_s7 + $0x88] sm:$0x3]  ;;  %v1763_v43 = vrot.slane %v5626_v62, 1 }
  0x32   : > { %4895 = vmatmul.mubr.msk.f32.gmra.mrb[4].mxu0 %vm371_vm1, %v5710_v45  ;;  %v3405_v4 = vrot.slane %v5822_v60, 1  ;;  %v3528_v32 = vrot.slane %v5822_v60, 2  ;;  %v3406_v18 = vrot.slane %v2814_v1, 1  ;;  %v3529_v20 = vrot.slane %v2814_v1, 2  ;;  %v4355_v49 = vld [vmem:[%s6495_s3 + $0x48] sm:$0xf] }
  0x33   : > { %4897 = vmatprep.mubr.msk.f32.mxu0 %vm371_vm1, %v5717_v51  ;;  %v1594_v1 = vld [vmem:[%s5490_s6 + $0x98] sm:$0x3] }
  0x34   : > { %4713 = vmatmul.mubr.msk.f32.gmra.mrb[4].mxu1 %vm371_vm1, %v5722_v52  ;;  %v5846_v38 = vsel %vm521_vm2, %v3405_v4, %v3406_v18  ;;  %v2552_v4 = vrot.slane %v1594_v1, 1  ;;  %v5911_v18 = vld [vmem:[%s5466_s17 + $0x80] sm:$0xff] }
  0x35   : > { %4715 = vmatprep.mubr.msk.f32.mxu1 %vm371_vm1, %v5730_v61 }
  0x36   : > { %4898 = vmatmul.mubr.msk.f32.gmra.mrb[6].mxu0 %vm371_vm1, %v5736_v2 }
  0x37   : > { %4902 = vmatprep.mubr.msk.f32.mxu0 %vm371_vm1, %v5503_v11 }
  0x38   : > { %4716 = vmatmul.mubr.msk.f32.gmra.mrb[6].mxu1 %vm371_vm1, %v5744_v13 }
  0x39   : > { %4720 = vmatprep.mubr.msk.f32.mxu1 %vm371_vm1, %v683_v14  ;;  %v5837_v14 = vsel %vm680_vm3, %v702_v55, %v703_v56  ;;  %v2184_v56 = vrot.slane %v5681_v31, 1 }
  0x3a   : > { %4903 = vmatmul.mubr.msk.f32.vlgmr.msra.gmra.mrb[0].mxu0 %vm371_vm1, %v5514_v19 }
  0x3b   : > { %4915 = vmatpush3.msk.msra.mxu0 %vm396_vm0, %v5616_v58  ;;  %4905 = vmatprep.mubr.msk.f32.mxu0 %vm371_vm1, %v5518_v21  ;;  %v696_v58 = vrot.slane %v5543_v29, 2 }
  0x3c   : > { %4721 = vmatmul.mubr.msk.f32.vlgmr.msra.gmra.mrb[0].mxu1 %vm371_vm1, %v5758_v37  ;;  %4928 = vmatprep.subr.msk.mxu0 %vm396_vm0, %v4345_v41 }
  0x3d   : > { %4733 = vmatpush3.msk.msra.mxu1 %vm396_vm0, %v5668_v25  ;;  %4723 = vmatprep.mubr.msk.f32.mxu1 %vm371_vm1, %v5768_v36  ;;  %v700_v25 = vrot.slane %v5663_v24, 2  ;;  %v5807_v15 = vsel %vm680_vm3, %v696_v58, %v697_v7  ;;  %v1764_v58 = vrot.slane %v5629_v63, 1  ;;  %v5853_v7 = vsel %vm680_vm3, %v3528_v32, %v3529_v20  ;;  %v4365_v20 = vld [vmem:[%s6495_s3 + $0x4c] sm:$0xf] }
  0x3e   : > { %4906 = vmatmul.mubr.msk.f32.gmra.mrb[2].mxu0 %vm371_vm1, %v5590_v48  ;;  %4746 = vmatprep.subr.msk.mxu1 %vm396_vm0, %v4215_v53  ;;  %6520 = vst [vmem:[#allocation10_spill] sm:$0xff] %v5853_v7  ;;  %v5866_v63 = vsel %vm521_vm2, %v1760_v26, %v1761_v27  ;;  %v4235_v26 = vld [vmem:[%s6495_s3 + $0x18] sm:$0xf]  ;;  %v2674_v27 = vrot.slane %v5828_v44, 2 }
  0x3f   : > { %4908 = vmatprep.mubr.msk.f32.mxu0 %vm371_vm1, %v5626_v62  ;;  %v5819_v24 = vsel %vm680_vm3, %v699_v50, %v700_v25  ;;  %v1766_v50 = vrot.slane %v5638_v3, 1  ;;  %v1767_v25 = vrot.slane %v5641_v10, 1  ;;  %v5876_v55 = vsel %vm521_vm2, %v1763_v43, %v1764_v58 }
  0x40   : > { %4724 = vmatmul.mubr.msk.f32.gmra.mrb[2].mxu1 %vm371_vm1, %v5788_v57  ;;  %6521 = vst [vmem:[#allocation11_spill] sm:$0xff] %v5876_v55  ;;  %v2551_v10 = vrot.slane %v5828_v44, 1  ;;  %v2675_v43 = vrot.slane %v1594_v1, 2  ;;  %v961_v58 = vrot.slane %v5911_v18, 1  ;;  %v5994_v1 = vld [vmem:[%s5814_s7 + $0x40] sm:$0xff] }
  0x41   : > { %4726 = vmatprep.mubr.msk.f32.mxu1 %vm371_vm1, %v5795_v47  ;;  %v5892_v31 = vsel %vm521_vm2, %v1766_v50, %v1767_v25  ;;  %v5957_v50 = vld [vmem:[%s5814_s7] sm:$0xff] }
  0x42   : > { %4909 = vmatmul.mubr.msk.f32.gmra.mrb[4].mxu0 %vm371_vm1, %v5638_v3  ;;  %6522 = vst [vmem:[#allocation12_spill] sm:$0xff] %v5892_v31  ;;  %v2553_v32 = vsel %vm521_vm2, %v2551_v10, %v2552_v4  ;;  %v6001_v10 = vld [vmem:[%s5814_s7 + $0x8] sm:$0x3]  ;;  %v6009_v4 = vld [vmem:[%s5814_s7 + $0x50] sm:$0xff] }
  0x43   : > { %4911 = vmatprep.mubr.msk.f32.mxu0 %vm371_vm1, %v5678_v30 }
  0x44   : > { %4727 = vmatmul.mubr.msk.f32.gmra.mrb[4].mxu1 %vm371_vm1, %v5807_v15 }
  0x45   : > { %4729 = vmatprep.mubr.msk.f32.mxu1 %vm371_vm1, %v5819_v24 }
  0x46   : > { %4912 = vmatmul.mubr.msk.f32.gmra.mrb[6].mxu0 %vm371_vm1, %v5828_v44  ;;  %v2676_v44 = vsel %vm680_vm3, %v2674_v27, %v2675_v43  ;;  %v6019_v27 = vld [vmem:[%s5814_s7 + $0x18] sm:$0x3]  ;;  %v1084_v43 = vrot.slane %v5911_v18, 2 }
  0x47   : > { %4916 = vmatprep.mubr.msk.f32.mxu0 %vm371_vm1, %v5538_v28 }
  0x48   : > { %4730 = vmatmul.mubr.msk.f32.gmra.mrb[6].mxu1 %vm371_vm1, %v5837_v14 }
  0x49   : > { %4734 = vmatprep.mubr.msk.f32.mxu1 %vm371_vm1, %v5472_v5  ;;  %v4225_v5 = vld [vmem:[%s6495_s3 + $0x14] sm:$0xf] }
  0x4a   : > { %4917 = vmatmul.mubr.msk.f32.vlgmr.msra.gmra.mrb[0].mxu0 %vm371_vm1, %v5554_v34 }
  0x4b   : > { %4929 = vmatpush3.msk.msra.mxu0 %vm396_vm0, %v4345_v41  ;;  %4919 = vmatprep.mubr.msk.f32.mxu0 %vm371_vm1, %v5568_v39  ;;  %v2183_v41 = vrot.slane %v5678_v30, 1  ;;  %v2971_v30 = vrot.slane %v6019_v27, 1 }
  0x4c   : > { %4735 = vmatmul.mubr.msk.f32.vlgmr.msra.gmra.mrb[0].mxu1 %vm371_vm1, %v5475_v6  ;;  %4942 = vmatprep.subr.msk.mxu0 %vm396_vm0, %v4355_v49 }
  0x4d   : > { %4747 = vmatpush3.msk.msra.mxu1 %vm396_vm0, %v4215_v53  ;;  %4737 = vmatprep.mubr.msk.f32.mxu1 %vm371_vm1, %v5493_v8  ;;  %v5897_v53 = vsel %vm521_vm2, %v2183_v41, %v2184_v56  ;;  %v4375_v41 = vld [vmem:[%s6495_s3 + $0x50] sm:$0xf] }
  0x4e   : > { %4920 = vmatmul.mubr.msk.f32.gmra.mrb[2].mxu0 %vm371_vm1, %v5866_v63  ;;  %4760 = vmatprep.subr.msk.mxu1 %vm396_vm0, %v4225_v5  ;;  %6523 = vst [vmem:[#allocation13_spill] sm:$0xff] %v5897_v53  ;;  %v5986_v56 = vld [vmem:[%s5814_s7 + $0x30] sm:$0xff] }
  0x4f   : > { %4922 = vmatprep.mubr.msk.f32.mxu0 %vm371_vm1, %v5876_v55 }
  0x50   : > { %4738 = vmatmul.mubr.msk.f32.gmra.mrb[2].mxu1 %vm371_vm1, %v5509_v16 }
  0x51   : > { %4740 = vmatprep.mubr.msk.f32.mxu1 %vm371_vm1, %v5543_v29 }
  0x52   : > { %4923 = vmatmul.mubr.msk.f32.gmra.mrb[4].mxu0 %vm371_vm1, %v5892_v31  ;;  %v6068_v31 = vld [vmem:[%s5814_s7 + $0x58] sm:$0x3] }
  0x53   : > { %4925 = vmatprep.mubr.msk.f32.mxu0 %vm371_vm1, %v5897_v53  ;;  %v6033_v53 = vld [vmem:[%s5814_s7 + $0x70] sm:$0xff] }
  0x54   : > { %4741 = vmatmul.mubr.msk.f32.gmra.mrb[4].mxu1 %vm371_vm1, %v5557_v35 }
  0x55   : > { %4743 = vmatprep.mubr.msk.f32.mxu1 %vm371_vm1, %v5586_v46 }
  0x56   : > { %4926 = vmatmul.mubr.msk.f32.gmra.mrb[6].mxu0 %vm371_vm1, %v2553_v32  ;;  %v2967_v32 = vrot.slane %v5957_v50, 1 }
  0x57   : > { %4930 = vmatprep.mubr.msk.f32.mxu0 %vm371_vm1, %v5606_v54 }
  0x58   : > { %4744 = vmatmul.mubr.msk.f32.gmra.mrb[6].mxu1 %vm371_vm1, %v5911_v18 }
  0x59   : > { %4748 = vmatprep.mubr.msk.f32.mxu1 %vm371_vm1, %v5633_v0  ;;  %v367_v0 = vld [vmem:[%s5466_s17 + $0x88] sm:$0x3] }
  0x5a   : > { %4931 = vmatmul.mubr.msk.f32.vlgmr.msra.gmra.mrb[0].mxu0 %vm371_vm1, %v5621_v59  ;;  %v6050_v59 = vld [vmem:[%s5814_s7 + $0x48] sm:$0x3] }
  0x5b   : > { %4943 = vmatpush3.msk.msra.mxu0 %vm396_vm0, %v4355_v49  ;;  %4933 = vmatprep.mubr.msk.f32.mxu0 %vm371_vm1, %v5658_v17  ;;  %v962_v49 = vrot.slane %v367_v0, 1  ;;  %v2980_v42 = vrot.slane %v6050_v59, 1 }
  0x5c   : > { %4749 = vmatmul.mubr.msk.f32.vlgmr.msra.gmra.mrb[0].mxu1 %vm371_vm1, %v5646_v12  ;;  %4956 = vmatprep.subr.msk.mxu0 %vm396_vm0, %v4365_v20 }
  0x5d   : > { %4761 = vmatpush3.msk.msra.mxu1 %vm396_vm0, %v4225_v5  ;;  %4751 = vmatprep.mubr.msk.f32.mxu1 %vm371_vm1, %v5691_v33  ;;  %v5962_v25 = vsel %vm521_vm2, %v961_v58, %v962_v49  ;;  %v5973_v5 = vld [vmem:[%s5814_s7 + $0x20] sm:$0xff]  ;;  %v1085_v58 = vrot.slane %v367_v0, 2  ;;  %v6025_v49 = vld [vmem:[%s5814_s7 + $0x28] sm:$0x3] }
  0x5e   : > { %4934 = vmatmul.mubr.msk.f32.gmra.mrb[2].mxu0 %vm371_vm1, %v5673_v22  ;;  %4774 = vmatprep.subr.msk.mxu1 %vm396_vm0, %v4235_v26  ;;  %v2973_v0 = vrot.slane %v5973_v5, 1  ;;  %v6042_v22 = vld [vmem:[%s5814_s7 + $0x38] sm:$0x3] }
  0x5f   : > { %4936 = vmatprep.mubr.msk.f32.mxu0 %vm371_vm1, %v5710_v45  ;;  %v2974_v45 = vrot.slane %v6025_v49, 1  ;;  %v6047_v17 = vsel %vm680_vm3, %v1084_v43, %v1085_v58  ;;  %v2977_v54 = vrot.slane %v6042_v22, 1  ;;  %v2979_v58 = vrot.slane %v5994_v1, 1 }
  0x60   : > { %4752 = vmatmul.mubr.msk.f32.gmra.mrb[2].mxu1 %vm371_vm1, %v5698_v40 }
  0x61   : > { %4754 = vmatprep.mubr.msk.f32.mxu1 %vm371_vm1, %v5722_v52  ;;  %v6063_v43 = vsel %vm521_vm2, %v2973_v0, %v2974_v45  ;;  %v4255_v0 = vld [vmem:[%s6495_s3 + $0x20] sm:$0xf]  ;;  %v6094_v7 = vsel %vm521_vm2, %v2979_v58, %v2980_v42  ;;  %v2988_v42 = vrot.slane %v6033_v53, 1  ;;  %v3126_v58 = vrot.slane %v6001_v10, 2 }
  0x62   : > { %4937 = vmatmul.mubr.msk.f32.gmra.mrb[4].mxu0 %vm371_vm1, %v5717_v51 }
  0x63   : > { %4939 = vmatprep.mubr.msk.f32.mxu0 %vm371_vm1, %v5736_v2  ;;  %v5968_v2 = vld [vmem:[%s5814_s7 + $0x10] sm:$0xff] }
  0x64   : > { %4755 = vmatmul.mubr.msk.f32.gmra.mrb[4].mxu1 %vm371_vm1, %v5730_v61 }
  0x65   : > { %4757 = vmatprep.mubr.msk.f32.mxu1 %vm371_vm1, %v5744_v13 }
  0x66   : > { %4940 = vmatmul.mubr.msk.f32.gmra.mrb[6].mxu0 %vm371_vm1, %v2676_v44  ;;  %v2970_v44 = vrot.slane %v5968_v2, 1 }
  0x67   : > { %4944 = vmatprep.mubr.msk.f32.mxu0 %vm371_vm1, %v5957_v50 }
  0x68   : > { %4758 = vmatmul.mubr.msk.f32.gmra.mrb[6].mxu1 %vm371_vm1, %v5962_v25 }
  0x69   : > { %4762 = vmatprep.mubr.msk.f32.mxu1 %vm371_vm1, %v5758_v37  ;;  %v4245_v37 = vld [vmem:[%s6495_s3 + $0x1c] sm:$0xf] }
  0x6a   : > { %4945 = vmatmul.mubr.msk.f32.vlgmr.msra.gmra.mrb[0].mxu0 %vm371_vm1, %v5968_v2 }
  0x6b   : > { %4957 = vmatpush3.msk.msra.mxu0 %vm396_vm0, %v4365_v20  ;;  %4947 = vmatprep.mubr.msk.f32.mxu0 %vm371_vm1, %v5973_v5  ;;  %v6015_v20 = vld [vmem:[%s5814_s7 + $0x60] sm:$0xff] }
  0x6c   : > { %4763 = vmatmul.mubr.msk.f32.vlgmr.msra.gmra.mrb[0].mxu1 %vm371_vm1, %v5768_v36  ;;  %4970 = vmatprep.subr.msk.mxu0 %vm396_vm0, %v4375_v41 }
  0x6d   : > { %4775 = vmatpush3.msk.msra.mxu1 %vm396_vm0, %v4235_v26  ;;  %4765 = vmatprep.mubr.msk.f32.mxu1 %vm371_vm1, %v5788_v57  ;;  %v2968_v26 = vrot.slane %v6001_v10, 1  ;;  %v3132_v10 = vrot.slane %v6025_v49, 2 }
  0x6e   : > { %4948 = vmatmul.mubr.msk.f32.gmra.mrb[2].mxu0 %vm371_vm1, %v5986_v56  ;;  %4788 = vmatprep.subr.msk.mxu1 %vm396_vm0, %v4245_v37 }
  0x6f   : > { %4950 = vmatprep.mubr.msk.f32.mxu0 %vm371_vm1, %v5994_v1  ;;  %v2969_v51 = vsel %vm521_vm2, %v2967_v32, %v2968_v26  ;;  %v6056_v32 = vsel %vm521_vm2, %v2970_v44, %v2971_v30  ;;  %v2976_v26 = vrot.slane %v5986_v56, 1  ;;  %v6073_v30 = vld [vmem:[%s5814_s7 + $0x68] sm:$0x3]  ;;  %v2982_v44 = vrot.slane %v6009_v4, 1 }
  0x70   : > { %4766 = vmatmul.mubr.msk.f32.gmra.mrb[2].mxu1 %vm371_vm1, %v5795_v47  ;;  %v2986_v55 = vrot.slane %v6073_v30, 1 }
  0x71   : > { %4768 = vmatprep.mubr.msk.f32.mxu1 %vm371_vm1, %v5807_v15  ;;  %v6084_v45 = vsel %vm521_vm2, %v2976_v26, %v2977_v54  ;;  %v6099_v54 = vld [vmem:[%s5814_s7 + $0x78] sm:$0x3] }
  0x72   : > { %4951 = vmatmul.mubr.msk.f32.gmra.mrb[4].mxu0 %vm371_vm1, %v6009_v4  ;;  %v2989_v26 = vrot.slane %v6099_v54, 1 }
  0x73   : > { %4953 = vmatprep.mubr.msk.f32.mxu0 %vm371_vm1, %v6015_v20 }
  0x74   : > { %4769 = vmatmul.mubr.msk.f32.gmra.mrb[4].mxu1 %vm371_vm1, %v5819_v24 }
  0x75   : > { %4771 = vmatprep.mubr.msk.f32.mxu1 %vm371_vm1, %v5837_v14 }
  0x76   : > { %4954 = vmatmul.mubr.msk.f32.gmra.mrb[6].mxu0 %vm371_vm1, %v6033_v53 }
  0x77   : > { %4958 = vmatprep.mubr.msk.f32.mxu0 %vm371_vm1, %v2969_v51  ;;  %v4385_v51 = vld [vmem:[%s6495_s3 + $0x54] sm:$0xf] }
  0x78   : > { %4772 = vmatmul.mubr.msk.f32.gmra.mrb[6].mxu1 %vm371_vm1, %v6047_v17 }
  0x79   : > { %4776 = vmatprep.mubr.msk.f32.mxu1 %vm371_vm1, %v5475_v6  ;;  %v2983_v6 = vrot.slane %v6068_v31, 1 }
  0x7a   : > { %4959 = vmatmul.mubr.msk.f32.vlgmr.msra.gmra.mrb[0].mxu0 %vm371_vm1, %v6056_v32 }
  0x7b   : > { %4971 = vmatpush3.msk.msra.mxu0 %vm396_vm0, %v4375_v41  ;;  %4961 = vmatprep.mubr.msk.f32.mxu0 %vm371_vm1, %v6063_v43  ;;  %v2985_v41 = vrot.slane %v6015_v20, 1 }
  0x7c   : > { %4777 = vmatmul.mubr.msk.f32.vlgmr.msra.gmra.mrb[0].mxu1 %vm371_vm1, %v5493_v8  ;;  %4984 = vmatprep.subr.msk.mxu0 %vm396_vm0, %v4385_v51  ;;  %v6111_v8 = vsel %vm521_vm2, %v2982_v44, %v2983_v6  ;;  %v3128_v44 = vrot.slane %v5968_v2, 2  ;;  %v6141_v6 = vld [vmem:[%s5466_s17 + $0x90] sm:$0xff] }
  0x7d   : > { %4789 = vmatpush3.msk.msra.mxu1 %vm396_vm0, %v4245_v37  ;;  %4779 = vmatprep.mubr.msk.f32.mxu1 %vm371_vm1, %v5509_v16  ;;  %v3125_v37 = vrot.slane %v5957_v50, 2  ;;  %v6119_v16 = vsel %vm521_vm2, %v2985_v41, %v2986_v55  ;;  %v6130_v50 = vsel %vm521_vm2, %v2988_v42, %v2989_v26  ;;  %v3135_v41 = vrot.slane %v6042_v22, 2  ;;  %v4395_v26 = vld [vmem:[%s6495_s3 + $0x58] sm:$0xf] }
  0x7e   : > { %4962 = vmatmul.mubr.msk.f32.gmra.mrb[2].mxu0 %vm371_vm1, %v6084_v45  ;;  %4802 = vmatprep.subr.msk.mxu1 %vm396_vm0, %v4255_v0  ;;  %v3138_v42 = vrot.slane %v6050_v59, 2  ;;  %v3140_v59 = vrot.slane %v6009_v4, 2 }
  0x7f   : > { %4964 = vmatprep.mubr.msk.f32.mxu0 %vm371_vm1, %v6094_v7  ;;  %v3127_v55 = vsel %vm680_vm3, %v3125_v37, %v3126_v58  ;;  %v4265_v37 = vld [vmem:[%s6495_s3 + $0x24] sm:$0xf] }
  0x80   : > { %4780 = vmatmul.mubr.msk.f32.gmra.mrb[2].mxu1 %vm371_vm1, %v5543_v29  ;;  %v3129_v29 = vrot.slane %v6019_v27, 2 }
  0x81   : > { %4782 = vmatprep.mubr.msk.f32.mxu1 %vm371_vm1, %v5557_v35  ;;  %v3131_v35 = vrot.slane %v5973_v5, 2 }
  0x82   : > { %4965 = vmatmul.mubr.msk.f32.gmra.mrb[4].mxu0 %vm371_vm1, %v6111_v8  ;;  %v6147_v27 = vsel %vm680_vm3, %v3128_v44, %v3129_v29  ;;  %v3144_v44 = vrot.slane %v6073_v30, 2  ;;  %v3146_v30 = vrot.slane %v6033_v53, 2  ;;  %v3147_v29 = vrot.slane %v6099_v54, 2 }
  0x83   : > { %4967 = vmatprep.mubr.msk.f32.mxu0 %vm371_vm1, %v6119_v16  ;;  %v6154_v49 = vsel %vm680_vm3, %v3131_v35, %v3132_v10  ;;  %v4425_v35 = vld [vmem:[%s6495_s3 + $0x64] sm:$0xf]  ;;  %v4295_v10 = vld [vmem:[%s6495_s3 + $0x30] sm:$0xf] }
  0x84   : > { %4783 = vmatmul.mubr.msk.f32.gmra.mrb[4].mxu1 %vm371_vm1, %v5586_v46  ;;  %v3134_v46 = vrot.slane %v5986_v56, 2  ;;  %v6211_v54 = vsel %vm680_vm3, %v3146_v30, %v3147_v29 }
  0x85   : > { %4785 = vmatprep.mubr.msk.f32.mxu1 %vm371_vm1, %v5911_v18  ;;  %v3137_v18 = vrot.slane %v5994_v1, 2 }
  0x86   : > { %4968 = vmatmul.mubr.msk.f32.gmra.mrb[6].mxu0 %vm371_vm1, %v6130_v50  ;;  %v6169_v22 = vsel %vm680_vm3, %v3134_v46, %v3135_v41  ;;  %v4435_v46 = vld [vmem:[%s6495_s3 + $0x68] sm:$0xf]  ;;  %v6527_v41 = vld [vmem:[#allocation2_spill] sm:$0xff] }
  0x87   : > { %4972 = vmatprep.mubr.msk.f32.mxu0 %vm371_vm1, %v3127_v55  ;;  %v6179_v58 = vsel %vm680_vm3, %v3137_v18, %v3138_v42  ;;  %v6530_v18 = vld [vmem:[#allocation5_spill] sm:$0xff]  ;;  %v6531_v42 = vld [vmem:[#allocation6_spill] sm:$0xff] }
  0x88   : > { %4786 = vmatmul.mubr.msk.f32.gmra.mrb[6].mxu1 %vm371_vm1, %v6141_v6 }
  0x89   : > { %4790 = vmatprep.mubr.msk.f32.mxu1 %vm371_vm1, %v5646_v12  ;;  %v3141_v12 = vrot.slane %v6068_v31, 2  ;;  %v369_v31 = vld [vmem:[%s5466_s17 + $0x98] sm:$0x3] }
  0x8a   : > { %4973 = vmatmul.mubr.msk.f32.vlgmr.msra.gmra.mrb[0].mxu0 %vm371_vm1, %v6147_v27  ;;  %v1330_v55 = vrot.slane %v369_v31, 1 }
  0x8b   : > { %4985 = vmatpush3.msk.msra.mxu0 %vm396_vm0, %v4385_v51  ;;  %4975 = vmatprep.mubr.msk.f32.mxu0 %vm371_vm1, %v6154_v49  ;;  %v3143_v51 = vrot.slane %v6015_v20, 2 }
  0x8c   : > { %4791 = vmatmul.mubr.msk.f32.vlgmr.msra.gmra.mrb[0].mxu1 %vm371_vm1, %v5691_v33  ;;  %4998 = vmatprep.subr.msk.mxu0 %vm396_vm0, %v4395_v26  ;;  %v6194_v33 = vsel %vm680_vm3, %v3140_v59, %v3141_v12 }
  0x8d   : > { %4803 = vmatpush3.msk.msra.mxu1 %vm396_vm0, %v4255_v0  ;;  %4793 = vmatprep.mubr.msk.f32.mxu1 %vm371_vm1, %v5698_v40  ;;  %v6201_v40 = vsel %vm680_vm3, %v3143_v51, %v3144_v44  ;;  %v1329_v0 = vrot.slane %v6141_v6, 1 }
  0x8e   : > { %4976 = vmatmul.mubr.msk.f32.gmra.mrb[2].mxu0 %vm371_vm1, %v6169_v22  ;;  %4816 = vmatprep.subr.msk.mxu1 %vm396_vm0, %v4265_v37 }
  0x8f   : > { %4978 = vmatprep.mubr.msk.f32.mxu0 %vm371_vm1, %v6179_v58 }
  0x90   : > { %4794 = vmatmul.mubr.msk.f32.gmra.mrb[2].mxu1 %vm371_vm1, %v5722_v52  ;;  %v1331_v52 = vsel %vm521_vm2, %v1329_v0, %v1330_v55 }
  0x91   : > { %4796 = vmatprep.mubr.msk.f32.mxu1 %vm371_vm1, %v5730_v61  ;;  %v4405_v61 = vld [vmem:[%s6495_s3 + $0x5c] sm:$0xf] }
  0x92   : > { %4979 = vmatmul.mubr.msk.f32.gmra.mrb[4].mxu0 %vm371_vm1, %v6194_v33 }
  0x93   : > { %4981 = vmatprep.mubr.msk.f32.mxu0 %vm371_vm1, %v6201_v40 }
  0x94   : > { %4797 = vmatmul.mubr.msk.f32.gmra.mrb[4].mxu1 %vm371_vm1, %v5744_v13  ;;  %v4275_v13 = vld [vmem:[%s6495_s3 + $0x28] sm:$0xf] }
  0x95   : > { %4799 = vmatprep.mubr.msk.f32.mxu1 %vm371_vm1, %v5962_v25 }
  0x96   : > { %4982 = vmatmul.mubr.msk.f32.gmra.mrb[6].mxu0 %vm371_vm1, %v6211_v54 }
  0x97   : > { %4986 = vmatprep.mubr.msk.f32.mxu0 %vm371_vm1, %v5968_v2 }
  0x98   : > { %4800 = vmatmul.mubr.msk.f32.gmra.mrb[6].mxu1 %vm371_vm1, %v1331_v52 }
  0x99   : > { %4804 = vmatprep.mubr.msk.f32.mxu1 %vm371_vm1, %v5768_v36  ;;  %v1452_v36 = vrot.slane %v6141_v6, 2 }
  0x9a   : > { %4987 = vmatmul.mubr.msk.f32.vlgmr.msra.gmra.mrb[0].mxu0 %vm371_vm1, %v5973_v5 }
  0x9b   : > { %4999 = vmatpush3.msk.msra.mxu0 %vm396_vm0, %v4395_v26  ;;  %4989 = vmatprep.mubr.msk.f32.mxu0 %vm371_vm1, %v5986_v56  ;;  %v6532_v26 = vld [vmem:[#allocation8_spill] sm:$0xff] }
  0x9c   : > { %4805 = vmatmul.mubr.msk.f32.vlgmr.msra.gmra.mrb[0].mxu1 %vm371_vm1, %v5788_v57  ;;  %5012 = vmatprep.subr.msk.mxu0 %vm396_vm0, %v4405_v61  ;;  %v1453_v57 = vrot.slane %v369_v31, 2 }
  0x9d   : > { %4817 = vmatpush3.msk.msra.mxu1 %vm396_vm0, %v4265_v37  ;;  %4807 = vmatprep.mubr.msk.f32.mxu1 %vm371_vm1, %v5795_v47 }
  0x9e   : > { %4990 = vmatmul.mubr.msk.f32.gmra.mrb[2].mxu0 %vm371_vm1, %v5994_v1  ;;  %4830 = vmatprep.subr.msk.mxu1 %vm396_vm0, %v4275_v13  ;;  %v1454_v47 = vsel %vm680_vm3, %v1452_v36, %v1453_v57 }
  0x9f   : > { %4992 = vmatprep.mubr.msk.f32.mxu0 %vm371_vm1, %v6009_v4 }
  0xa0   : > { %4808 = vmatmul.mubr.msk.f32.gmra.mrb[2].mxu1 %vm371_vm1, %v5807_v15  ;;  %v1575_v15 = vld [vmem:[%s5490_s6] sm:$0xff] }
  0xa1   : > { %4810 = vmatprep.mubr.msk.f32.mxu1 %vm371_vm1, %v5819_v24  ;;  %v4415_v24 = vld [vmem:[%s6495_s3 + $0x60] sm:$0xf]  ;;  %v1745_v25 = vrot.slane %v1575_v15, 1 }
  0xa2   : > { %4993 = vmatmul.mubr.msk.f32.gmra.mrb[4].mxu0 %vm371_vm1, %v6015_v20 }
  0xa3   : > { %4995 = vmatprep.mubr.msk.f32.mxu0 %vm371_vm1, %v6033_v53 }
  0xa4   : > { %4811 = vmatmul.mubr.msk.f32.gmra.mrb[4].mxu1 %vm371_vm1, %v5837_v14  ;;  %v1576_v14 = vld [vmem:[%s5490_s6 + $0x8] sm:$0x3] }
  0xa5   : > { %4813 = vmatprep.mubr.msk.f32.mxu1 %vm371_vm1, %v6047_v17  ;;  %v4285_v17 = vld [vmem:[%s6495_s3 + $0x2c] sm:$0xf]  ;;  %v1746_v2 = vrot.slane %v1576_v14, 1  ;;  %v1904_v6 = vrot.slane %v1576_v14, 2 }
  0xa6   : > { %4996 = vmatmul.mubr.msk.f32.gmra.mrb[6].mxu0 %vm371_vm1, %v5822_v60 }
  0xa7   : > { %5000 = vmatprep.mubr.msk.f32.mxu0 %vm371_vm1, %v6056_v32  ;;  %v1747_v32 = vsel %vm521_vm2, %v1745_v25, %v1746_v2 }
  0xa8   : > { %4814 = vmatmul.mubr.msk.f32.gmra.mrb[6].mxu1 %vm371_vm1, %v1454_v47 }
  0xa9   : > { %4818 = vmatprep.mubr.msk.f32.mxu1 %vm371_vm1, %v1575_v15 }
  0xaa   : > { %5001 = vmatmul.mubr.msk.f32.vlgmr.msra.gmra.mrb[0].mxu0 %vm371_vm1, %v6063_v43 }
  0xab   : > { %5013 = vmatpush3.msk.msra.mxu0 %vm396_vm0, %v4405_v61  ;;  %5003 = vmatprep.mubr.msk.f32.mxu0 %vm371_vm1, %v6084_v45 }
  0xac   : > { %4819 = vmatmul.mubr.msk.f32.vlgmr.msra.gmra.mrb[0].mxu1 %vm371_vm1, %v5499_v9  ;;  %5026 = vmatprep.subr.msk.mxu0 %vm396_vm0, %v4415_v24 }
  0xad   : > { %4831 = vmatpush3.msk.msra.mxu1 %vm396_vm0, %v4275_v13  ;;  %4821 = vmatprep.mubr.msk.f32.mxu1 %vm371_vm1, %v5503_v11 }
  0xae   : > { %5004 = vmatmul.mubr.msk.f32.gmra.mrb[2].mxu0 %vm371_vm1, %v6094_v7  ;;  %4844 = vmatprep.subr.msk.mxu1 %vm396_vm0, %v4285_v17 }
  0xaf   : > { %5006 = vmatprep.mubr.msk.f32.mxu0 %vm371_vm1, %v6111_v8 }
  0xb0   : > { %4822 = vmatmul.mubr.msk.f32.gmra.mrb[2].mxu1 %vm371_vm1, %v5514_v19 }
  0xb1   : > { %4824 = vmatprep.mubr.msk.f32.mxu1 %vm371_vm1, %v5518_v21 }
  0xb2   : > { %5007 = vmatmul.mubr.msk.f32.gmra.mrb[4].mxu0 %vm371_vm1, %v6119_v16 }
  0xb3   : > { %5009 = vmatprep.mubr.msk.f32.mxu0 %vm371_vm1, %v6130_v50 }
  0xb4   : > { %4825 = vmatmul.mubr.msk.f32.gmra.mrb[4].mxu1 %vm371_vm1, %v5590_v48 }
  0xb5   : > { %4827 = vmatprep.mubr.msk.f32.mxu1 %vm371_vm1, %v5626_v62 }
  0xb6   : > { %5010 = vmatmul.mubr.msk.f32.gmra.mrb[6].mxu0 %vm371_vm1, %v5846_v38 }
  0xb7   : > { %5014 = vmatprep.mubr.msk.f32.mxu0 %vm371_vm1, %v6147_v27  ;;  %v6525_v27 = vld [vmem:[#allocation10_spill] sm:$0xff] }
  0xb8   : > { %4828 = vmatmul.mubr.msk.f32.gmra.mrb[6].mxu1 %vm371_vm1, %v5638_v3 }
  0xb9   : > { %4832 = vmatprep.mubr.msk.f32.mxu1 %vm371_vm1, %v1747_v32 }
  0xba   : > { %5015 = vmatmul.mubr.msk.f32.vlgmr.msra.gmra.mrb[0].mxu0 %vm371_vm1, %v6154_v49 }
  0xbb   : > { %5027 = vmatpush3.msk.msra.mxu0 %vm396_vm0, %v4415_v24  ;;  %5017 = vmatprep.mubr.msk.f32.mxu0 %vm371_vm1, %v6169_v22 }
  0xbc   : > { %4833 = vmatmul.mubr.msk.f32.vlgmr.msra.gmra.mrb[0].mxu1 %vm371_vm1, %v5526_v23  ;;  %5040 = vmatprep.subr.msk.mxu0 %vm396_vm0, %v4425_v35  ;;  %v1903_v23 = vrot.slane %v1575_v15, 2 }
  0xbd   : > { %4845 = vmatpush3.msk.msra.mxu1 %vm396_vm0, %v4285_v17  ;;  %4835 = vmatprep.mubr.msk.f32.mxu1 %vm371_vm1, %v5538_v28  ;;  %v6524_v28 = vld [vmem:[#allocation11_spill] sm:$0xff] }
  0xbe   : > { %5018 = vmatmul.mubr.msk.f32.gmra.mrb[2].mxu0 %vm371_vm1, %v6179_v58  ;;  %4858 = vmatprep.subr.msk.mxu1 %vm396_vm0, %v4295_v10 }
  0xbf   : > { %5020 = vmatprep.mubr.msk.f32.mxu0 %vm371_vm1, %v6194_v33 }
  0xc0   : > { %4836 = vmatmul.mubr.msk.f32.gmra.mrb[2].mxu1 %vm371_vm1, %v5554_v34  ;;  %v1905_v34 = vsel %vm680_vm3, %v1903_v23, %v1904_v6 }
  0xc1   : > { %4838 = vmatprep.mubr.msk.f32.mxu1 %vm371_vm1, %v5568_v39  ;;  %v6526_v39 = vld [vmem:[#allocation12_spill] sm:$0xff] }
  0xc2   : > { %5021 = vmatmul.mubr.msk.f32.gmra.mrb[4].mxu0 %vm371_vm1, %v6201_v40 }
  0xc3   : > { %5023 = vmatprep.mubr.msk.f32.mxu0 %vm371_vm1, %v6211_v54 }
  0xc4   : > { %4839 = vmatmul.mubr.msk.f32.gmra.mrb[4].mxu1 %vm371_vm1, %v5866_v63 }
  0xc5   : > { %4841 = vmatprep.mubr.msk.f32.mxu1 %vm371_vm1, %v6524_v28 }
  0xc6   : > { %5024 = vmatmul.mubr.msk.f32.gmra.mrb[6].mxu0 %vm371_vm1, %v6525_v27 }
  0xc7   : > { %5028 = vmatprep.mubr.msk.f32.mxu0 %vm371_vm1, %v5973_v5  ;;  %v6528_v5 = vld [vmem:[#allocation3_spill] sm:$0xff] }
  0xc8   : > { %4842 = vmatmul.mubr.msk.f32.gmra.mrb[6].mxu1 %vm371_vm1, %v6526_v39 }
  0xc9   : > { %4846 = vmatprep.mubr.msk.f32.mxu1 %vm371_vm1, %v1905_v34 }
  0xca   : > { %5029 = vmatmul.mubr.msk.f32.vlgmr.msra.gmra.mrb[0].mxu0 %vm371_vm1, %v5986_v56  ;;  %v5330_v56 = vld [vmem:[%s6495_s3 + $0x34] sm:$0xf] }
  0xcb   : > { %5041 = vmatpush3.msk.msra.mxu0 %vm396_vm0, %v4425_v35  ;;  %5031 = vmatprep.mubr.msk.f32.mxu0 %vm371_vm1, %v5994_v1  ;;  %v6529_v1 = vld [vmem:[#allocation4_spill] sm:$0xff] }
  0xcc   : > { %4847 = vmatmul.mubr.msk.f32.vlgmr.msra.gmra.mrb[0].mxu1 %vm371_vm1, %v6527_v41  ;;  %5054 = vmatprep.subr.msk.mxu0 %vm396_vm0, %v4435_v46 }
  0xcd   : > { %4859 = vmatpush3.msk.msra.mxu1 %vm396_vm0, %v4295_v10  ;;  %4849 = vmatprep.mubr.msk.f32.mxu1 %vm371_vm1, %v6528_v5 }
  0xce   : > { %5032 = vmatmul.mubr.msk.f32.gmra.mrb[2].mxu0 %vm371_vm1, %v6009_v4  ;;  %5068 = vmatprep.subr.msk.mxu1 %vm396_vm0, %v5330_v56  ;;  %v2815_v4 = vld [vmem:[%s5814_s7 + $0x90] sm:$0xff] }
  0xcf   : > { %5034 = vmatprep.mubr.msk.f32.mxu0 %vm371_vm1, %v6015_v20  ;;  %v6533_v20 = vld [vmem:[#allocation9_spill] sm:$0xff] }
  0xd0   : > { %4850 = vmatmul.mubr.msk.f32.gmra.mrb[2].mxu1 %vm371_vm1, %v6529_v1 }
  0xd1   : > { %4852 = vmatprep.mubr.msk.f32.mxu1 %vm371_vm1, %v6530_v18 }
  0xd2   : > { %5035 = vmatmul.mubr.msk.f32.gmra.mrb[4].mxu0 %vm371_vm1, %v6033_v53 }
  0xd3   : > { %5037 = vmatprep.mubr.msk.f32.mxu0 %vm371_vm1, %v5822_v60  ;;  %v2816_v60 = vld [vmem:[%s5814_s7 + $0x98] sm:$0x3]  ;;  %s4172_s7 = sshll.u32 %s6553_s18, 3 }
  0xd4   : > { %4853 = vmatmul.mubr.msk.f32.gmra.mrb[4].mxu1 %vm371_vm1, %v6531_v42  ;;  %v3774_v53 = vrot.slane %v2816_v60, 1  ;;  %s340_s17 = sadd.s32 %s4173_s13, %s4172_s7 }
  0xd5   : > { %4855 = vmatprep.mubr.msk.f32.mxu1 %vm371_vm1, %v6532_v26  ;;  %s4174_s16 = sshll.u32 %s340_s17, 3 }
  0xd6   : > { %5038 = vmatmul.mubr.msk.f32.gmra.mrb[6].mxu0 %vm371_vm1, %v2815_v4  ;;  %s6459_s27 = scalar_lea.vmem %s6497_s5, %s4174_s16 }
  0xd7   : > { %5042 = vmatprep.mubr.msk.f32.mxu0 %vm371_vm1, %v6063_v43 }
  0xd8   : > { %4856 = vmatmul.mubr.msk.f32.gmra.mrb[6].mxu1 %vm371_vm1, %v6533_v20 }
  0xd9   : > { %4860 = vmatprep.mubr.msk.f32.mxu1 %vm371_vm1, %v5499_v9  ;;  %v3773_v9 = vrot.slane %v2815_v4, 1 }
  0xda   : > { %5043 = vmatmul.mubr.msk.f32.vlgmr.msra.gmra.mrb[0].mxu0 %vm371_vm1, %v6084_v45  ;;  %v4175_v45 = vld [vmem:[%s6496_s4] ss:$0 sm:$0xff] }
  0xdb   : > { %5055 = vmatpush3.msk.msra.mxu0 %vm396_vm0, %v4435_v46  ;;  %5045 = vmatprep.mubr.msk.f32.mxu0 %vm371_vm1, %v6094_v7 }
  0xdc   : > { %4861 = vmatmul.mubr.msk.f32.vlgmr.msra.gmra.mrb[0].mxu1 %vm371_vm1, %v5503_v11  ;;  %v3775_v11 = vsel %vm521_vm2, %v3773_v9, %v3774_v53 }
  0xdd   : > { %5069 = vmatpush3.msk.msra.mxu1 %vm396_vm0, %v5330_v56  ;;  %4863 = vmatprep.mubr.msk.f32.mxu1 %vm371_vm1, %v5514_v19  ;;  %v6534_v19 = vld [vmem:[#allocation7_spill] sm:$0xff] }
  0xde   : > { %5046 = vmatmul.mubr.msk.f32.gmra.mrb[2].mxu0 %vm371_vm1, %v6111_v8 }
  0xdf   : > { %5048 = vmatprep.mubr.msk.f32.mxu0 %vm371_vm1, %v6119_v16 }
  0xe0   : > { %4864 = vmatmul.mubr.msk.f32.gmra.mrb[2].mxu1 %vm371_vm1, %v5518_v21  ;;  %v3896_v21 = vrot.slane %v2815_v4, 2 }
  0xe1   : > { %4866 = vmatprep.mubr.msk.f32.mxu1 %vm371_vm1, %v5590_v48  ;;  %v3897_v48 = vrot.slane %v2816_v60, 2 }
  0xe2   : > { %5049 = vmatmul.mubr.msk.f32.gmra.mrb[4].mxu0 %vm371_vm1, %v6130_v50 }
  0xe3   : > { %5051 = vmatprep.mubr.msk.f32.mxu0 %vm371_vm1, %v5846_v38 }
  0xe4   : > { %4867 = vmatmul.mubr.msk.f32.gmra.mrb[4].mxu1 %vm371_vm1, %v5626_v62  ;;  %v6535_v62 = vld [vmem:[#allocation13_spill] sm:$0xff] }
  0xe5   : > { %4869 = vmatprep.mubr.msk.f32.mxu1 %vm371_vm1, %v5638_v3  ;;  %v3898_v3 = vsel %vm680_vm3, %v3896_v21, %v3897_v48 }
  0xe6   : > { %5052 = vmatmul.mubr.msk.f32.gmra.mrb[6].mxu0 %vm371_vm1, %v3775_v11 }
  0xe7   : > { %5056 = vmatprep.mubr.msk.f32.mxu0 %vm371_vm1, %v6154_v49 }
  0xe8   : > { %4870 = vmatmul.mubr.msk.f32.gmra.mrb[6].mxu1 %vm371_vm1, %v6534_v19 }
  0xe9   : > { %4880 = vmatprep.mubr.msk.f32.mxu1 %vm371_vm1, %v5866_v63 }
  0xea   : > { %5057 = vmatmul.mubr.msk.f32.vlgmr.msra.gmra.mrb[0].mxu0 %vm371_vm1, %v6169_v22 }
  0xeb   : > { %5059 = vmatprep.mubr.msk.f32.mxu0 %vm371_vm1, %v6179_v58 }
  0xec   : > { %4881 = vmatmul.mubr.msk.f32.vlgmr.msra.gmra.mrb[4].mxu1 %vm371_vm1, %v6524_v28 }
  0xed   : > { %4883 = vmatprep.mubr.msk.f32.mxu1 %vm371_vm1, %v6526_v39 }
  0xee   : > { %5060 = vmatmul.mubr.msk.f32.gmra.mrb[2].mxu0 %vm371_vm1, %v6194_v33 }
  0xef   : > { %5062 = vmatprep.mubr.msk.f32.mxu0 %vm371_vm1, %v6201_v40 }
  0xf0   : > { %4884 = vmatmul.mubr.msk.f32.gmra.mrb[6].mxu1 %vm371_vm1, %v6535_v62 }
  0xf2   : > { %5063 = vmatmul.mubr.msk.f32.gmra.mrb[4].mxu0 %vm371_vm1, %v6211_v54 }
  0xf3   : > { %5065 = vmatprep.mubr.msk.f32.mxu0 %vm371_vm1, %v6525_v27 }
  0xf6   : > { %5066 = vmatmul.mubr.msk.f32.gmra.mrb[6].mxu0 %vm371_vm1, %v3898_v3 }
 0x1af   : > { %v4862_v38 = vpop.f32.mrb[0].mxu1 }
 0x1b0   : > { %v2135_v7 = vpop.f32.mrb[1].mxu1  ;;  %v5070_v8 = vadd.f32 %v4862_v38, %v4175_v45 }
 0x1b1   : > { %v5072_v16 = vadd.f32 %v4175_v45, %v2135_v7 }
 0x1b3   : > { %v4865_v63 = vpop.f32.mrb[2].mxu1 }
 0x1b4   : > { %v2145_v43 = vpop.f32.mrb[3].mxu1  ;;  %v5074_v37 = vadd.f32 %v4865_v63, %v4175_v45 }
 0x1b5   : > { %v5076_v51 = vadd.f32 %v4175_v45, %v2145_v43 }
 0x1bd   : > { %v5058_v50 = vpop.f32.mrb[0].mxu0 }
 0x1be   : > { %v5071_v49 = vadd.f32 %v5070_v8, %v5058_v50  ;;  %v3972_v22 = vpop.f32.mrb[1].mxu0 }
 0x1bf   : > { %v5073_v59 = vadd.f32 %v5072_v16, %v3972_v22  ;;  %v4882_v12 = vpop.f32.mrb[4].mxu1 }
 0x1c0   : > { %4020 = vst.msk [vmem:[%s6459_s27 + $0x8] sm:$0xff] %vm371_vm1, %v5071_v49  ;;  %v2279_v58 = vpop.f32.mrb[5].mxu1  ;;  %v5078_v40 = vadd.f32 %v4882_v12, %v4175_v45 }
 0x1c1   : > { %4019 = vst.msk [vmem:[%s6459_s27] sm:$0xff] %vm371_vm1, %v5073_v59  ;;  %v5061_v44 = vpop.f32.mrb[2].mxu0  ;;  %v5080_v55 = vadd.f32 %v4175_v45, %v2279_v58 }
 0x1c2   : > { %v5075_v31 = vadd.f32 %v5074_v37, %v5061_v44  ;;  %v3982_v33 = vpop.f32.mrb[3].mxu0 }
 0x1c3   : > { %v5077_v30 = vadd.f32 %v5076_v51, %v3982_v33  ;;  %v4885_v29 = vpop.f32.mrb[6].mxu1 }
 0x1c4   : > { %4022 = vst.msk [vmem:[%s6459_s27 + $0x18] sm:$0xff] %vm371_vm1, %v5075_v31  ;;  %v2289_v0 = vpop.f32.mrb[7].mxu1  ;;  %v5082_v36 = vadd.f32 %v4885_v29, %v4175_v45 }
 0x1c5   : > { %4021 = vst.msk [vmem:[%s6459_s27 + $0x10] sm:$0xff] %vm371_vm1, %v5077_v30  ;;  %v5064_v54 = vpop.f32.mrb[4].mxu0  ;;  %v5084_v57 = vadd.f32 %v4175_v45, %v2289_v0 }
 0x1c6   : > { %v5079_v52 = vadd.f32 %v5078_v40, %v5064_v54  ;;  %v3992_v61 = vpop.f32.mrb[5].mxu0 }
 0x1c7   : > { %v5081_v13 = vadd.f32 %v5080_v55, %v3992_v61 }
 0x1c8   : > { %4024 = vst.msk [vmem:[%s6459_s27 + $0x28] sm:$0xff] %vm371_vm1, %v5079_v52 }
 0x1c9   : > { %4023 = vst.msk [vmem:[%s6459_s27 + $0x20] sm:$0xff] %vm371_vm1, %v5081_v13  ;;  %v5067_v47 = vpop.f32.mrb[6].mxu0 }
 0x1ca   : > { %v5083_v15 = vadd.f32 %v5082_v36, %v5067_v47  ;;  %v4002_v24 = vpop.f32.mrb[7].mxu0 }
 0x1cb   : > { %v5085_v17 = vadd.f32 %v5084_v57, %v4002_v24 }
 0x1cc   : > { %4026 = vst.msk [vmem:[%s6459_s27 + $0x38] sm:$0xff] %vm371_vm1, %v5083_v15 }
 0x1cd   : > { %4025 = vst.msk [vmem:[%s6459_s27 + $0x30] sm:$0xff] %vm371_vm1, %v5085_v17 }
 0x1ce PF: > { %s15_s22 = sadd.s32 1, %s5369_s22   ;;  %s6536_s18 = smov %s5361_s20 }
 0x1cf   : > { %p12_p10 = scmp.ge.s32.totalorder %s15_s22, 18   ;;  %s6537_s19 = smov %s5365_s21 }
 0x1d0   : > { %s6538_s20 = smov %s6541_s23  ;;  %s6539_s21 = smov %s6545_s24 }
 0x1d1   :  { %14 = sbr.rel (!%p12_p10) target bundleno = 3 (0x3), region = 102 }

</bundles_post_ra>
